<compile_context>
chip_gen: v7x
topology: tpu7x:2x2x1
jax: 0.10.0
libtpu: 0.0.40
codegen_flags: <defaults>
</compile_context>

<pallas_src>
import jax
import jax.numpy as jnp
from jax import lax
from jax.experimental import pallas as pl
from jax.experimental.pallas import tpu as pltpu

NUM_CLASS = 400
FEAT_CH = 1024
_LANE = 128
_FEAT_BLOCK_BUDGET = 12 * 1024 * 1024   # bytes per feature tile (x2 double-buffer)
_VMEM_LIMIT = 48 * 1024 * 1024          # safe on v5e/v6e (128 MiB) and v7x (64 MiB)


def _choose_spatial_tile(S, tn, c_blk, itemsize, budget=_FEAT_BLOCK_BUDGET):
    """Spatial tile size: full extent when S <= 128, otherwise the largest
    128-multiple that fits the byte budget (preferring one that divides S so
    the tail block needs no masking).  Never exceeds the array extent."""
    if S <= _LANE:
        return S
    per_lane = tn * c_blk * itemsize
    max_t = max(_LANE, (budget // per_lane) // _LANE * _LANE)
    limit = min(max_t, (S // _LANE) * _LANE)
    best_div = 0
    t = _LANE
    while t <= limit:
        if S % t == 0:
            best_div = t
        t += _LANE
    return best_div if best_div else limit


def _make_head_kernel(ts, chunk_w, S_total, n_s_blocks):
    """Builds the kernel for static tile geometry.

    ts       : spatial tile width (last dim of the feature block)
    chunk_w  : accumulator lane width (128 when ts is a 128-multiple, else ts)
    S_total  : true spatial extent T*H*W (for masking the ragged tail)
    n_s_blocks: number of spatial grid steps (= cdiv(S_total, ts))
    """
    n_chunks = ts // chunk_w
    ragged = (n_s_blocks * ts != S_total)
    tail = S_total - (n_s_blocks - 1) * ts   # valid elements in the last s-block

    def _accumulate(x_ref, acc_ref, masked):
        # Pure element-wise VPU adds (no per-step cross-lane reduce).
        for ck in range(n_chunks):
            lo = ck * chunk_w
            if masked and lo >= tail:
                continue                      # chunk entirely in the padded region
            chunk = x_ref[:, :, lo:lo + chunk_w].astype(jnp.float32)
            if masked and lo + chunk_w > tail:
                lane = lax.broadcasted_iota(jnp.int32, (1, 1, chunk_w), 2)
                chunk = jnp.where(lane < (tail - lo), chunk, 0.0)
            acc_ref[...] += chunk

    def kernel(x_ref, w_ref, b_ref, o_ref, acc_ref):
        # x_ref  : (tn, c_blk, ts)       backbone features, native (N, C, S) layout
        # w_ref  : (c_blk, nc_pad)       1x1x1 conv weight slice, pre-scaled by 1/S
        # b_ref  : (1, nc_pad)           bias (pre-divided by the channel-split count)
        # o_ref  : (1, tn, nc_pad)       per-channel-split partial logits
        # acc_ref: (tn, c_blk, chunk_w)  f32 running spatial partial sums
        s = pl.program_id(2)

        @pl.when(s == 0)
        def _():
            acc_ref[...] = jnp.zeros_like(acc_ref)

        if not ragged:
            _accumulate(x_ref, acc_ref, masked=False)
        else:
            if n_s_blocks > 1:
                @pl.when(s < n_s_blocks - 1)
                def _():
                    _accumulate(x_ref, acc_ref, masked=False)

            @pl.when(s == n_s_blocks - 1)
            def _():
                _accumulate(x_ref, acc_ref, masked=True)

        @pl.when(s == n_s_blocks - 1)
        def _():
            # Single deferred cross-lane reduce (XLU, once per output tile),
            # then the 1x1x1 Conv3d == dense layer on the pooled channels (MXU).
            # Dropout3d is identity in eval mode.
            pooled = jnp.sum(acc_ref[...], axis=-1)            # (tn, c_blk)
            out = jnp.dot(pooled, w_ref[...],
                          preferred_element_type=jnp.float32)  # (tn, nc_pad)
            o_ref[0] = out + b_ref[...]

    return kernel


def classifier_head(feats_ncthw, conv_w, conv_b):
    """feats_ncthw: (N, 1024, T, H, W) backbone output (PyTorch NCTHW layout).
    conv_w: (num_class, 1024, 1, 1, 1), conv_b: (num_class,).
    Returns (N, num_class, 1, 1, 1), matching the PyTorch module."""
    N, C, T, H, W = feats_ncthw.shape
    num_class = conv_w.shape[0]
    S = T * H * W

    # Native-layout view (free reshape, no HBM copy): stream as (N, C, S).
    x = feats_ncthw.reshape(N, C, S)

    nc_pad = pl.cdiv(num_class, _LANE) * _LANE

    # Batch tile: fixed 8 rows so VMEM is independent of N; full batch when N<8.
    # Ragged tail batch rows are row-independent; their OOB writes are dropped.
    tn = 8 if N >= 8 else N
    n_b = pl.cdiv(N, tn)

    # Split the channel (contraction) dim across a leading parallel grid axis
    # when the batch axis is degenerate, so both v7x TensorCores get work.
    n_csplit = 2 if (n_b < 2 and C % 16 == 0) else 1
    c_blk = C // n_csplit

    ts = _choose_spatial_tile(S, tn, c_blk, x.dtype.itemsize)
    n_s = pl.cdiv(S, ts)
    lane_grouped = (ts >= _LANE) and (ts % _LANE == 0)
    chunk_w = _LANE if lane_grouped else ts

    # Fold the 1/S of the average pool into W (tiny host-side work) and 1/n_csplit
    # into the bias (partials are summed afterwards).  Lane-pad classes 400->512
    # for unmasked vector stores; the pad is sliced off below.
    w2d = conv_w.reshape(num_class, C).T.astype(jnp.float32) * (1.0 / S)
    w2d = jnp.pad(w2d, ((0, 0), (0, nc_pad - num_class)))
    b2d = (jnp.pad(conv_b.astype(jnp.float32), (0, nc_pad - num_class))
           * (1.0 / n_csplit)).reshape(1, nc_pad)

    kernel = _make_head_kernel(ts=ts, chunk_w=chunk_w, S_total=S, n_s_blocks=n_s)

    flops = N * C * S + 2 * N * C * nc_pad
    bytes_accessed = (x.size * x.dtype.itemsize
                      + w2d.size * 4 + b2d.size * 4
                      + n_csplit * N * nc_pad * 4)

    partials = pl.pallas_call(
        kernel,
        out_shape=jax.ShapeDtypeStruct((n_csplit, N, nc_pad), jnp.float32),
        grid_spec=pltpu.PrefetchScalarGridSpec(
            num_scalar_prefetch=0,
            grid=(n_csplit, n_b, n_s),          # reduction axis (s) last
            in_specs=[
                # Feature tiles stream through the double-buffered pipeline.
                pl.BlockSpec((tn, c_blk, ts), lambda c, i, s: (i, c, s)),
                # Weight slice / bias stay resident across the s sweep.
                pl.BlockSpec((c_blk, nc_pad), lambda c, i, s: (c, 0)),
                pl.BlockSpec((1, nc_pad), lambda c, i, s: (0, 0)),
            ],
            out_specs=pl.BlockSpec((1, tn, nc_pad), lambda c, i, s: (c, i, 0)),
            scratch_shapes=[pltpu.VMEM((tn, c_blk, chunk_w), jnp.float32)],
        ),
        compiler_params=pltpu.CompilerParams(
            dimension_semantics=("parallel", "parallel", "arbitrary"),
            vmem_limit_bytes=_VMEM_LIMIT,
        ),
        cost_estimate=pl.CostEstimate(flops=int(flops), transcendentals=0,
                                      bytes_accessed=int(bytes_accessed)),
    )(x, w2d, b2d)

    # Combine channel-split partials (tiny), drop lane padding, restore the
    # PyTorch (N, num_class, 1, 1, 1) shape.
    out_dtype = jnp.promote_types(feats_ncthw.dtype, conv_w.dtype)
    logits = jnp.sum(partials, axis=0)[:, :num_class]
    return logits.reshape(N, num_class, 1, 1, 1).astype(out_dtype)


if __name__ == "__main__":
    key = jax.random.PRNGKey(0)
    k_f1, k_f2, k_w, k_b = jax.random.split(key, 4)

    # Conv params: weight init matches the module (std=0.01 normal); the bias is
    # randomized (module inits it to 0) purely to exercise the bias path.
    conv_w = 0.01 * jax.random.normal(k_w, (NUM_CLASS, FEAT_CH, 1, 1, 1), jnp.float32)
    conv_b = 0.01 * jax.random.normal(k_b, (NUM_CLASS,), jnp.float32)

    def ref_head(feats):
        pooled = jnp.mean(feats.astype(jnp.float32), axis=(2, 3, 4))      # (N, C)
        out = pooled @ conv_w.reshape(NUM_CLASS, FEAT_CH).T + conv_b      # (N, cls)
        return out.reshape(feats.shape[0], NUM_CLASS, 1, 1, 1)

    # Case 1: lane-aligned spatial extent (S = 4*8*8 = 256) -> multi-chunk
    # deferred-reduce steady state, no masking.
    feats1 = jax.random.normal(k_f1, (2, FEAT_CH, 4, 8, 8), dtype=jnp.float32)
    out1 = jax.block_until_ready(classifier_head(feats1, conv_w, conv_b))
    assert out1.shape == (2, NUM_CLASS, 1, 1, 1)
    assert jnp.allclose(out1, ref_head(feats1), atol=1e-3, rtol=1e-3)

    # Case 2: realistic S3D-like spatial extent (S = 2*14*14 = 392) -> ragged
    # last spatial block exercising the masked-tail accumulation path.
    feats2 = jax.random.normal(k_f2, (2, FEAT_CH, 2, 14, 14), dtype=jnp.float32)
    out2 = jax.block_until_ready(classifier_head(feats2, conv_w, conv_b))
    assert out2.shape == (2, NUM_CLASS, 1, 1, 1)
    assert jnp.allclose(out2, ref_head(feats2), atol=1e-3, rtol=1e-3)

    print("KERNEL_OK")
</pallas_src>

<mosaic_0001>
module attributes {stable_mosaic.version = 11 : i64} {
  func.func @kernel(%arg0: i32, %arg1: i32, %arg2: i32, %arg3: memref<2x512x256xf32, #tpu.memory_space<vmem>>, %arg4: memref<512x512xf32, #tpu.memory_space<vmem>>, %arg5: memref<1x512xf32, #tpu.memory_space<vmem>>, %arg6: memref<1x2x512xf32, #tpu.memory_space<vmem>>, %arg7: memref<2x512x128xf32, #tpu.memory_space<vmem>>) attributes {dimension_semantics = [#tpu.dimension_semantics<parallel>, #tpu.dimension_semantics<parallel>, #tpu.dimension_semantics<arbitrary>], iteration_bounds = array<i64: 2, 1, 1>, scalar_prefetch = 0 : i64, scratch_operands = 1 : i64, tpu.core_type = #tpu.core_type<tc>, window_params = [{transform_indices = @transform_0, window_bounds = array<i64: 2, 512, 256>}, {transform_indices = @transform_1, window_bounds = array<i64: 512, 512>}, {pipeline_mode = #tpu.pipeline_mode<synchronous>, transform_indices = @transform_2, window_bounds = array<i64: 1, 512>}, {transform_indices = @transform_3, window_bounds = array<i64: 1, 2, 512>}]} {
    %c0_i32 = arith.constant 0 : i32
    %0 = arith.cmpi eq, %arg2, %c0_i32 : i32
    %1 = arith.extui %0 : i1 to i32
    %c0_i32_0 = arith.constant 0 : i32
    %2 = arith.cmpi ne, %1, %c0_i32_0 : i32
    scf.if %2 {
      %cst = arith.constant 0.000000e+00 : f32
      %14 = vector.broadcast %cst : f32 to vector<2x512x128xf32>
      %c0_19 = arith.constant 0 : index
      %c0_20 = arith.constant 0 : index
      %c0_21 = arith.constant 0 : index
      %15 = vector.load %arg7[%c0_19, %c0_20, %c0_21] : memref<2x512x128xf32, #tpu.memory_space<vmem>>, vector<2x512x128xf32>
      tpu.vector_store %arg7[%c0_19, %c0_20, %c0_21], %14 {strides = array<i32>} : memref<2x512x128xf32, #tpu.memory_space<vmem>>, vector<2x512x128xf32>,
    } else {
    }
    %c0 = arith.constant 0 : index
    %c0_1 = arith.constant 0 : index
    %c0_2 = arith.constant 0 : index
    %3 = vector.load %arg3[%c0, %c0_1, %c0_2] : memref<2x512x256xf32, #tpu.memory_space<vmem>>, vector<2x512x128xf32>
    %c0_3 = arith.constant 0 : index
    %c0_4 = arith.constant 0 : index
    %c0_5 = arith.constant 0 : index
    %4 = vector.load %arg7[%c0_3, %c0_4, %c0_5] : memref<2x512x128xf32, #tpu.memory_space<vmem>>, vector<2x512x128xf32>
    %5 = arith.addf %4, %3 : vector<2x512x128xf32>
    %c0_6 = arith.constant 0 : index
    %c0_7 = arith.constant 0 : index
    %c0_8 = arith.constant 0 : index
    %6 = vector.load %arg7[%c0_6, %c0_7, %c0_8] : memref<2x512x128xf32, #tpu.memory_space<vmem>>, vector<2x512x128xf32>
    tpu.vector_store %arg7[%c0_6, %c0_7, %c0_8], %5 {strides = array<i32>} : memref<2x512x128xf32, #tpu.memory_space<vmem>>, vector<2x512x128xf32>,
    %c0_9 = arith.constant 0 : index
    %c0_10 = arith.constant 0 : index
    %c128 = arith.constant 128 : index
    %7 = vector.load %arg3[%c0_9, %c0_10, %c128] : memref<2x512x256xf32, #tpu.memory_space<vmem>>, vector<2x512x128xf32>
    %c0_11 = arith.constant 0 : index
    %c0_12 = arith.constant 0 : index
    %c0_13 = arith.constant 0 : index
    %8 = vector.load %arg7[%c0_11, %c0_12, %c0_13] : memref<2x512x128xf32, #tpu.memory_space<vmem>>, vector<2x512x128xf32>
    %9 = arith.addf %8, %7 : vector<2x512x128xf32>
    %c0_14 = arith.constant 0 : index
    %c0_15 = arith.constant 0 : index
    %c0_16 = arith.constant 0 : index
    %10 = vector.load %arg7[%c0_14, %c0_15, %c0_16] : memref<2x512x128xf32, #tpu.memory_space<vmem>>, vector<2x512x128xf32>
    tpu.vector_store %arg7[%c0_14, %c0_15, %c0_16], %9 {strides = array<i32>} : memref<2x512x128xf32, #tpu.memory_space<vmem>>, vector<2x512x128xf32>,
    %c0_i32_17 = arith.constant 0 : i32
    %11 = arith.cmpi eq, %arg2, %c0_i32_17 : i32
    %12 = arith.extui %11 : i1 to i32
    %c0_i32_18 = arith.constant 0 : i32
    %13 = arith.cmpi ne, %12, %c0_i32_18 : i32
    scf.if %13 {
      %c0_19 = arith.constant 0 : index
      %c0_20 = arith.constant 0 : index
      %c0_21 = arith.constant 0 : index
      %14 = vector.load %arg7[%c0_19, %c0_20, %c0_21] : memref<2x512x128xf32, #tpu.memory_space<vmem>>, vector<2x512x128xf32>
      %cst = arith.constant dense<0.000000e+00> : vector<2x512xf32>
      %15 = vector.multi_reduction <add>, %14, %cst [2] : vector<2x512x128xf32> to vector<2x512xf32>
      %c0_22 = arith.constant 0 : index
      %c0_23 = arith.constant 0 : index
      %16 = vector.load %arg4[%c0_22, %c0_23] : memref<512x512xf32, #tpu.memory_space<vmem>>, vector<512x512xf32>
      %cst_24 = arith.constant dense<0.000000e+00> : vector<2x512xf32>
      %17 = tpu.matmul %15, %16, %cst_24 {dimension_numbers = #tpu.dot_dimension_numbers<[1], [0], [0], [1], [0, 0, 1, 1], [], []>} : vector<2x512xf32>, vector<512x512xf32>, vector<2x512xf32> -> vector<2x512xf32>
      %c0_25 = arith.constant 0 : index
      %c0_26 = arith.constant 0 : index
      %18 = vector.load %arg5[%c0_25, %c0_26] : memref<1x512xf32, #tpu.memory_space<vmem>>, vector<1x512xf32>
      %19 = vector.broadcast %18 : vector<1x512xf32> to vector<2x512xf32>
      %20 = arith.addf %17, %19 : vector<2x512xf32>
      %c0_27 = arith.constant 0 : index
      %c0_28 = arith.constant 0 : index
      %c0_29 = arith.constant 0 : index
      %21 = vector.load %arg6[%c0_27, %c0_28, %c0_29] : memref<1x2x512xf32, #tpu.memory_space<vmem>>, vector<1x2x512xf32>
      %22 = vector.shape_cast %21 : vector<1x2x512xf32> to vector<2x512xf32>
      %23 = vector.shape_cast %20 : vector<2x512xf32> to vector<1x2x512xf32>
      tpu.vector_store %arg6[%c0_27, %c0_28, %c0_29], %23 {strides = array<i32>} : memref<1x2x512xf32, #tpu.memory_space<vmem>>, vector<1x2x512xf32>,
    } else {
    }
    return
  }
  func.func @transform_0(%arg0: i32, %arg1: i32, %arg2: i32) -> (i32, i32, i32) {
    %c0_i32 = arith.constant 0 : i32
    return %arg1, %arg0, %arg2 : i32, i32, i32
  }
  func.func @transform_1(%arg0: i32, %arg1: i32, %arg2: i32) -> (i32, i32) {
    %c0_i32 = arith.constant 0 : i32
    %c0_i32_0 = arith.constant 0 : i32
    return %arg0, %c0_i32 : i32, i32
  }
  func.func @transform_2(%arg0: i32, %arg1: i32, %arg2: i32) -> (i32, i32) {
    %c0_i32 = arith.constant 0 : i32
    %c0_i32_0 = arith.constant 0 : i32
    %c0_i32_1 = arith.constant 0 : i32
    return %c0_i32, %c0_i32_0 : i32, i32
  }
  func.func @transform_3(%arg0: i32, %arg1: i32, %arg2: i32) -> (i32, i32, i32) {
    %c0_i32 = arith.constant 0 : i32
    %c0_i32_0 = arith.constant 0 : i32
    return %arg0, %arg1, %c0_i32 : i32, i32, i32
  }
}

</mosaic_0001>

<bundles_post_ra>
// kernel: tpu_custom_call.1
= control target key start
LH: loop header
LB: loop body
LE: loop exit
PB: predicated region body
PF: predicated region fallthrough
CT: control target
= control target key end

     0   :  { %s5161_s0 = inlined_call_operand.hbm [shape: f32[2,1024,256], index: 0, kind: input, shape index: {}]   ;;  %s5162_s1 = inlined_call_operand.hbm [shape: f32[1024,512], index: 1, kind: input, shape index: {}]   ;;  %s5163_s2 = inlined_call_operand.hbm [shape: f32[1,512], index: 2, kind: input, shape index: {}]   ;;  %s5164_s3 = inlined_call_operand.hbm [shape: f32[2,2,512], index: 3, kind: output, shape index: {}]  }
   0x1   :  { %5171 = sst [smem:[#allocation18_spill]] %s5161_s0 }
   0x2   :  { %5172 = sst [smem:[#allocation19_spill]] %s5163_s2 }
   0x3   :  { %8 = vsyncpa [#allocation4], 0 }
   0x4   :  { %10 = vsyncpa [#allocation4 + $0x1], 0 }
   0x5   :  { %11 = vsyncpa [#allocation7], 0 }
   0x6   :  { %13 = vsyncpa [#allocation7 + $0x1], 0 }
   0x7   :  { %14 = vsyncpa [#allocation5], 0 }
   0x8   :  { %16 = vsyncpa [#allocation5 + $0x1], 0  ;;  %s3929_s12 = smov 0   ;;  %s3931_s13 = smov 0  }
   0x9   :  { %s3933_s14 = smov 0   ;;  %s3935_s15 = smov 0  }
   0xa   :  { %s3937_s16 = smov 0   ;;  %s3939_s17 = smov 0  }
   0xb LB: > { %s3960_s18 = sadd.s32 4294967295, %s3895_s17   ;;  %s3370_s19 = sadd.s32 4294967294, %s3895_s17   ;;  %s3895_s17 = sphi %s3939_s17, %s22_s17   ;;  %s3891_s16 = sphi %s3937_s16, %s5194_s16   ;;  %s3887_s15 = sphi %s3935_s15, %s5193_s15   ;;  %s3883_s14 = sphi %s3933_s14, %s5192_s14   ;;  %s3879_s13 = sphi %s3931_s13, %s5191_s13   ;;  %s3875_s12 = sphi %s3929_s12, %s5190_s12  }
   0xc   : > { %s41_s20 = sadd.s32 1, %s3891_s16  ;;  %s52_s21 = sadd.s32 1, %s3883_s14 }
   0xd   : > { %p43_p0 = scmp.ge.s32.totalorder %s41_s20, 2  ;;  %p59_p1 = scmp.ne.s32.totalorder %s3883_s14, %s3879_s13 }
   0xe   : > { %p60_p2 = scmp.eq.s32.totalorder %s3895_s17, 0  ;;  %p65_p3 = scmp.ne.s32.totalorder %s3879_s13, %s3875_s12 }
   0xf   : > { %s5196_s20 = smov (%p43_p0, %s41_s20), 0  ;;  %p5165_p5 = scmp.eq.s32.totalorder %s3960_s18, 0 }
  0x10   : > { %5173 = sst [smem:[#allocation17_spill]] %s5196_s20  ;;  %p3972_p4 = por %p60_p2, %p59_p1 }
  0x11   : > { %s46_s23 = ssub.s32 %s3891_s16, %s5196_s20  ;;  %p138_p6 = scmp.eq.s32.totalorder %s3960_s18, 1 }
  0x12   : > { %s5174_s22 = scalar_select %p3972_p4, 1, 0 }
  0x13   : > { %p50_p7 = scmp.eq.s32.totalorder %s46_s23, 0  ;;  %p3982_p8 = por %p5165_p5, %p65_p3 }
  0x14   : > { %p3986_p9 = por %p138_p6, %p59_p1  ;;  %p144_p10 = scmp.eq.s32.totalorder %s3370_s19, 1 }
  0x15   : > { %s5175_s24 = scalar_select %p3982_p8, 1, 0 }
  0x16   : > { %s5176_s25 = scalar_select %p3986_p9, 1, 0 }
  0x17   : > { %s3991_s26 = scalar_select %p50_p7, %s3883_s14, %s52_s21  }
  0x18   : > { %p3993_p11 = por %p144_p10, %p65_p3  ;;  %p3371_p12 = scmp.ge.s32.totalorder %s3895_s17, 1 }
  0x19   : > { %p151_p13 = scmp.lt.s32.totalorder %s3895_s17, 3  ;;  %s3897_s29 = smov [#allocation8]  }
  0x1a   : > { %s5177_s27 = scalar_select %p3993_p11, 1, 0 }
  0x1b   : > { %p3999_p0 = pnand %p3371_p12, %p151_p13  ;;  %s164_s30 = sshll.u32 %s3897_s29, 4  ;;  %s165_s30 = int_to_ptr.vmem [resolvable:$true] %s164_s30 }
  0x1c   : > { %s5180_s2 = sld [smem:[#allocation19_spill]] }
  0x1d   : > { %s5178_s28 = scalar_select %p3999_p0, 1, 0 }
  0x1e   : > { %p3680_p1 = pneg %p3999_p0 }
  0x20   : > { %p4007_p2 = pnand %p3680_p1, %p5165_p5 }
  0x22   : > { %s3749_s7 = scalar_lea.hbm %s5180_s2, 64  ;;  %p3751_p6 = pneg %p4007_p2 }
  0x23   : > { %p3750_p3 = scmp.ne.s32.totalorder %s5180_s2, %s3749_s7  ;;  %p3756_p12 = scmp.lt.u32.totalorder %s3749_s7, %s5180_s2 }
  0x25   : > { %p3752_p7 = pnand %p3751_p6, %p3750_p3 }
  0x27   : > { %p3753_p10 = pneg %p3752_p7 }
  0x29   : > { %p3758_p13 = pnand %p3756_p12, %p3753_p10 }
  0x2b   : > { %3761 = shalt.err (!%p3758_p13)
}
  0x2c   : > { %s3762_s19 = scalar_lea.vmem %s165_s30, 64  ;;  %p3770_p9 = scmp.lt.s32.totalorder %s165_s30, %s165_s30 }
  0x2d   : > { %p3763_p1 = scmp.ne.s32.totalorder %s165_s30, %s3762_s19  ;;  %p3771_p8 = scmp.lt.s32.totalorder %s3762_s19, %s3762_s19 }
  0x2f   : > { %p3765_p5 = pnand %p3763_p1, %p3751_p6  ;;  %p3772_p0 = por %p3771_p8, %p3770_p9 }
  0x31   : > { %p3766_p11 = pneg %p3765_p5 }
  0x33   : > { %p3773_p4 = pnand %p3772_p0, %p3766_p11 }
  0x35   : > { %3776 = shalt.err (!%p3773_p4)
}
  0x36   : > { %3683 = dma.hbm_to_vmem [thread:$0]  (!%p4007_p2), %s5180_s2, 64, %s165_s30, [#allocation7]  }
  0x37   : > { %p3373_p3 = scmp.ge.s32.totalorder %s3895_s17, 2 }
  0x39   : > { %171 = sbr.rel (%p3373_p3) target bundleno = 104 (0x68), region = 20 }
  0x40   : > { %s175_s29 = sand.u32 1, %s3883_s14   ;;  %s3395_s5 = sshll.u32 %s3891_s16, 14 }
  0x41   : > { %s3374_s4 = sshll.u32 %s175_s29, 11  ;;  %s5181_s0 = sld [smem:[#allocation18_spill]] }
  0x42   : > { %p5182_p4 = scmp.ne.s32.totalorder %s5174_s22, 0  ;;  %s179_s9 = scalar_lea.vmem [#allocation3], %s3374_s4 }
  0x43   : > { %s204_s10 = sshll.u32 %s179_s9, 4  ;;  %s3898_s19 = smov 32768   ;;  %s205_s10 = int_to_ptr.vmem [resolvable:$true] %s204_s10 }
  0x44   : > { %s3665_s8 = scalar_select %p5182_p4, [#allocation0], [#allocation12] }
  0x45   : > { %3666 = sst [smem:[#allocation11]] (%p5182_p4), %s3898_s19  ;;  %s3899_s21 = smov 16384  }
  0x46   : > { %s196_s11 = sld [smem:[%s3665_s8]]   ;;  %s3900_s23 = smov 64  }
  0x47   : > { %s191_s30 = scalar_lea.hbm %s5181_s0, %s3395_s5  ;;  %3667 = sst [smem:[#allocation11 + $0x1]] (%p5182_p4), %s3899_s21 }
  0x48   : > { %3668 = sst [smem:[#allocation11 + $0x2]] (%p5182_p4), %s3900_s23  ;;  %s3901_s2 = smov 256  }
  0x49   : > { %3669 = sst [smem:[#allocation11 + $0x3]] (%p5182_p4), %s3901_s2  ;;  %s3902_s6 = smov 16  }
  0x4a   : > { %3670 = sst [smem:[#allocation11 + $0x4]] (%p5182_p4), %s3901_s2  ;;  %s176_s8 = scalar_lea.sflag [#allocation4], %s175_s29 }
  0x4b   : > { %3671 = sst [smem:[#allocation11 + $0x5]] (%p5182_p4), %s3902_s6  ;;  %s3903_s9 = smov [#allocation10]  }
  0x4c   : > { %s3378_s5 = sshll.u32 %s196_s11, 26  ;;  %s227_s19 = sand.u32 1, %s3895_s17  }
  0x4d   : > { %s3379_s7 = sadd.s32 134217728, %s3378_s5  ;;  %s3397_s21 = sshll.u32 %s3891_s16, 15 }
  0x4e   : > { %3672 = dma.general (%p5182_p4), %s191_s30, 32768, %s205_s10, %s176_s8, %s3903_s9, [#allocation11], %s3379_s7, 0  }
  0x4f   : > { %s4056_s20 = scalar_lea.hbm %s5162_s1, %s3397_s21  ;;  %s231_s2 = scalar_lea.vmem [#allocation6], %s3374_s4 }
  0x50   : > { %s239_s11 = sshll.u32 %s231_s2, 4  ;;  %s4060_s29 = scalar_lea.sflag [#allocation7], %s227_s19  ;;  %s4058_s11 = int_to_ptr.vmem [resolvable:$true] %s239_s11 }
  0x51   : > { %s3777_s30 = scalar_lea.hbm %s4056_s20, 32768  ;;  %s3781_s0 = scalar_lea.hbm %s5162_s1, 65536 }
  0x52   : > { %p3778_p5 = scmp.ne.s32.totalorder %s4056_s20, %s3777_s30  ;;  %p3782_p11 = scmp.lt.u32.totalorder %s4056_s20, %s5162_s1 }
  0x53   : > { %p3783_p0 = scmp.lt.u32.totalorder %s3781_s0, %s3777_s30  ;;  %p3785_p6 = scmp.lt.u32.totalorder %s3777_s30, %s4056_s20 }
  0x54   : > { %p3779_p8 = pnand %p3778_p5, %p5182_p4 }
  0x55   : > { %p3784_p2 = por %p3783_p0, %p3782_p11 }
  0x56   : > { %p3780_p9 = pneg %p3779_p8 }
  0x57   : > { %p3786_p7 = por %p3785_p6, %p3784_p2 }
  0x59   : > { %p3787_p10 = pnand %p3786_p7, %p3780_p9 }
  0x5b   : > { %3790 = shalt.err (!%p3787_p10)
}
  0x5c   : > { %s3791_s4 = scalar_lea.vmem %s4058_s11, 32768  ;;  %s3904_s8 = smov [#allocation6]  }
  0x5d   : > { %p3792_p12 = scmp.ne.s32.totalorder %s4058_s11, %s3791_s4  ;;  %s3795_s9 = sshll.u32 %s3904_s8, 4  ;;  %s3796_s9 = int_to_ptr.vmem [resolvable:$false] %s3795_s9 }
  0x5e   : > { %s3797_s19 = scalar_lea.vmem %s3796_s9, 65536  ;;  %p3798_p5 = scmp.lt.s32.totalorder %s4058_s11, %s3796_s9 }
  0x5f   : > { %p3793_p13 = pnand %p3792_p12, %p5182_p4  ;;  %p3799_p8 = scmp.lt.s32.totalorder %s3797_s19, %s3791_s4 }
  0x61   : > { %p3794_p1 = pneg %p3793_p13  ;;  %p3800_p11 = por %p3799_p8, %p3798_p5 }
  0x63   : > { %p3801_p0 = pnand %p3800_p11, %p3794_p1 }
  0x65   : > { %3804 = shalt.err (!%p3801_p0)
}
  0x66   : > { %s3905_s21 = smov 512   ;;  %s3906_s23 = smov 32  }
  0x67   : > { %3673 = dma.hbm_to_vmem [thread:$0]  (%p5182_p4), %s4056_s20, 32768, %s4058_s11, %s4060_s29, %s3905_s21, %s3905_s21, %s3906_s23  }
  0x68 PF: > { %p5183_p9 = scmp.ne.s32.totalorder %s5178_s28, 0 }
  0x69   : > { %s4087_s2 = sand.u32 (!%p5183_p9), 1, %s3879_s13   ;;  %p5184_p2 = scmp.ne.s32.totalorder (!%p5183_p9), %s5175_s24, 0 }
  0x6a   : > { %251 = sbr.rel (%p5183_p9) target bundleno = 757 (0x2f5), region = 32  ;;  %s3385_s30 = sshll.u32 (!%p5183_p9), %s4087_s2, 11 }
  0x6b   : > { %s254_s10 = scalar_lea.sflag (!%p5183_p9), [#allocation4], %s4087_s2  ;;  %s4091_s5 = scalar_lea.vmem (!%p5183_p9), [#allocation3], %s3385_s30 }
  0x71   : > { %3858 = dma.done.wait (%p5184_p2), %s254_s10, 32768  }
  0x72   : > { %3860 = vsyncadd (%p5184_p2), %s254_s10, 4294934528  ;;  %s262_s20 = sand.u32 1, %s3960_s18   ;;  %s4098_s28 = scalar_lea.vmem [#allocation6], %s3385_s30 }
  0x73   : > { %s263_s22 = scalar_lea.sflag [#allocation7], %s262_s20 }
  0x74   : > { %3862 = dma.done.wait (%p5184_p2), %s263_s22, 32768  }
  0x75   : > { %3864 = vsyncadd (%p5184_p2), %s263_s22, 4294934528  ;;  %p5185_p4 = scmp.eq.s32.totalorder %s3960_s18, 0 }
  0x77   : > { %3866 = dma.done.wait (%p5185_p4), [#allocation7], 64   ;;  %p5186_p6 = pmov %p5185_p4 }
  0x78   : > { %v514_v0 = vld [vmem:[%s4091_s5 + $0x500] sm:$0xff]  ;;  %v1026_v1 = vld [vmem:[%s4091_s5 + $0x508] sm:$0xff]  ;;  %v515_v5 = vld [vmem:[%s4091_s5 + $0x510] sm:$0xff]  ;;  %vm2262_vm0 = vcmask 130112   ;;  %vm2269_vm1 = vcmask 195712   ;;  %vm2276_vm2 = vcmask 261312  }
  0x79   : > { %3868 = vsyncadd (%p5186_p6), [#allocation7], 4294967232  ;;  %v450_v2 = vld [vmem:[%s4091_s5 + $0x100] sm:$0xff]  ;;  %v1282_v3 = vadd.f32 %v1026_v1, %v514_v0  ;;  %v962_v4 = vld [vmem:[%s4091_s5 + $0x108] sm:$0xff]  ;;  %vm2283_vm3 = vcmask 326912   ;;  %vm2290_vm4 = vcmask 392512  }
  0x7a   : > { %v1027_v6 = vld [vmem:[%s4091_s5 + $0x518] sm:$0xff]  ;;  %v1218_v7 = vadd.f32 %v962_v4, %v450_v2  ;;  %v451_v8 = vld [vmem:[%s4091_s5 + $0x110] sm:$0xff]  ;;  %v434_v14 = vld [vmem:[%s4091_s5] sm:$0xff]  ;;  %vm2297_vm5 = vcmask 458112   ;;  %vm2304_vm6 = vcmask 523712   ;;  %vm2311_vm7 = vcmask 589312  }
  0x7b   : > { %v963_v9 = vld [vmem:[%s4091_s5 + $0x118] sm:$0xff]  ;;  %1749 = vadd.xlane.f32.xlu1 %v1282_v3  ;;  %v1283_v10 = vadd.f32 %v1027_v6, %v515_v5  ;;  %v435_v12 = vld [vmem:[%s4091_s5 + $0x10] sm:$0xff]  ;;  %v946_v15 = vld [vmem:[%s4091_s5 + $0x8] sm:$0xff]  ;;  %vm2318_vm8 = vcmask 654912   ;;  %vm2325_vm9 = vcmask 720512   ;;  %vm2332_vm10 = vcmask 786112  }
  0x7c   : > { %1621 = vadd.xlane.f32.xlu0 %v1218_v7  ;;  %v1219_v11 = vadd.f32 %v963_v9, %v451_v8  ;;  %v947_v13 = vld [vmem:[%s4091_s5 + $0x18] sm:$0xff]  ;;  %v1202_v17 = vadd.f32 %v946_v15, %v434_v14  ;;  %v498_v18 = vld [vmem:[%s4091_s5 + $0x400] sm:$0xff]  ;;  %v1010_v19 = vld [vmem:[%s4091_s5 + $0x408] sm:$0xff]  ;;  %vm2339_vm11 = vcmask 851712   ;;  %vm2346_vm12 = vcmask 917312   ;;  %s3388_s18 = sshll.u32 %s4087_s2, 3 }
  0x7d   : > { %v1203_v16 = vadd.f32 %v947_v13, %v435_v12  ;;  %v452_v20 = vld [vmem:[%s4091_s5 + $0x120] sm:$0xff]  ;;  %v964_v21 = vld [vmem:[%s4091_s5 + $0x128] sm:$0xff]  ;;  %v1266_v22 = vadd.f32 %v1010_v19, %v498_v18  ;;  %v499_v26 = vld [vmem:[%s4091_s5 + $0x410] sm:$0xff]  ;;  %vm2353_vm13 = vcmask 982912   ;;  %vm2360_vm14 = vcmask 1048512   ;;  %s3398_s24 = sshll.u32 %s3887_s15, 7 }
  0x7e   : > { %v1220_v23 = vadd.f32 %v964_v21, %v452_v20  ;;  %v516_v24 = vld [vmem:[%s4091_s5 + $0x520] sm:$0xff]  ;;  %v1028_v25 = vld [vmem:[%s4091_s5 + $0x528] sm:$0xff]  ;;  %v1011_v27 = vld [vmem:[%s4091_s5 + $0x418] sm:$0xff]  ;;  %vm2915_vm15 = vcmask 1041409   ;;  %s297_s11 = scalar_lea.vmem [#allocation9], %s3388_s18  ;;  %s5112_s7 = scalar_lea.hbm %s5164_s3, %s3398_s24 }
  0x7f   : > { %1751 = vadd.xlane.f32.xlu1 %v1283_v10  ;;  %v1284_v28 = vadd.f32 %v1028_v25, %v516_v24  ;;  %v1267_v29 = vadd.f32 %v1011_v27, %v499_v26  ;;  %v453_v30 = vld [vmem:[%s4091_s5 + $0x130] sm:$0xff]  ;;  %v965_v31 = vld [vmem:[%s4091_s5 + $0x138] sm:$0xff]  ;;  %v436_v32 = vld [vmem:[%s4091_s5 + $0x20] sm:$0xff]  ;;  %s3248_s29 = sshll.u32 %s297_s11, 4  ;;  %s3232_s4 = scalar_lea.sflag [#allocation5], %s4087_s2  ;;  %s5114_s29 = int_to_ptr.vmem [resolvable:$true] %s3248_s29 }
  0x80   : > { %1623 = vadd.xlane.f32.xlu0 %v1219_v11  ;;  %v948_v33 = vld [vmem:[%s4091_s5 + $0x28] sm:$0xff]  ;;  %v1221_v34 = vadd.f32 %v965_v31, %v453_v30  ;;  %v517_v36 = vld [vmem:[%s4091_s5 + $0x530] sm:$0xff]  ;;  %v1029_v37 = vld [vmem:[%s4091_s5 + $0x538] sm:$0xff]  ;;  %s3805_s8 = scalar_lea.vmem %s5114_s29, 128  ;;  %p5187_p10 = scmp.ne.s32.totalorder %s5176_s25, 0 }
  0x81   : > { %v1204_v35 = vadd.f32 %v948_v33, %v436_v32  ;;  %v500_v38 = vld [vmem:[%s4091_s5 + $0x420] sm:$0xff]  ;;  %v1012_v39 = vld [vmem:[%s4091_s5 + $0x428] sm:$0xff]  ;;  %v1285_v40 = vadd.f32 %v1029_v37, %v517_v36  ;;  %v437_v44 = vld [vmem:[%s4091_s5 + $0x30] sm:$0xff]  ;;  %p3806_p7 = scmp.ne.s32.totalorder %s5114_s29, %s3805_s8  ;;  %s3908_s15 = smov [#allocation9]  }
  0x82   : > { %v1268_v41 = vadd.f32 %v1012_v39, %v500_v38  ;;  %v454_v42 = vld [vmem:[%s4091_s5 + $0x140] sm:$0xff]  ;;  %v966_v43 = vld [vmem:[%s4091_s5 + $0x148] sm:$0xff]  ;;  %v949_v45 = vld [vmem:[%s4091_s5 + $0x38] sm:$0xff]  ;;  %s3809_s9 = sshll.u32 %s3908_s15, 4  ;;  %s3810_s9 = int_to_ptr.vmem [resolvable:$false] %s3809_s9 }
  0x83   : > { %1591 = vadd.xlane.f32.xlu1 %v1203_v16  ;;  %v1222_v46 = vadd.f32 %v966_v43, %v454_v42  ;;  %v1205_v47 = vadd.f32 %v949_v45, %v437_v44  ;;  %v518_v48 = vld [vmem:[%s4091_s5 + $0x540] sm:$0xff]  ;;  %v1030_v49 = vld [vmem:[%s4091_s5 + $0x548] sm:$0xff]  ;;  %v501_v50 = vld [vmem:[%s4091_s5 + $0x430] sm:$0xff]  ;;  %p3807_p12 = pnand %p3806_p7, %p5187_p10  ;;  %s3811_s19 = scalar_lea.vmem %s3810_s9, 256 }
  0x84   : > { %1589 = vadd.xlane.f32.xlu0 %v1202_v17  ;;  %v1013_v51 = vld [vmem:[%s4091_s5 + $0x438] sm:$0xff]  ;;  %v1286_v52 = vadd.f32 %v1030_v49, %v518_v48  ;;  %v455_v54 = vld [vmem:[%s4091_s5 + $0x150] sm:$0xff]  ;;  %v438_v56 = vld [vmem:[%s4091_s5 + $0x40] sm:$0xff]  ;;  %p3812_p1 = scmp.lt.s32.totalorder %s5114_s29, %s3810_s9  ;;  %p3813_p5 = scmp.lt.s32.totalorder %s3811_s19, %s3805_s8 }
  0x85   : > { %v1269_v53 = vadd.f32 %v1013_v51, %v501_v50  ;;  %v967_v55 = vld [vmem:[%s4091_s5 + $0x158] sm:$0xff]  ;;  %v950_v57 = vld [vmem:[%s4091_s5 + $0x48] sm:$0xff]  ;;  %v519_v60 = vld [vmem:[%s4091_s5 + $0x550] sm:$0xff]  ;;  %p3808_p13 = pneg %p3807_p12 }
  0x86   : > { %v1223_v58 = vadd.f32 %v967_v55, %v455_v54  ;;  %v1206_v59 = vadd.f32 %v950_v57, %v438_v56  ;;  %v1031_v61 = vld [vmem:[%s4091_s5 + $0x558] sm:$0xff]  ;;  %v502_v62 = vld [vmem:[%s4091_s5 + $0x440] sm:$0xff]  ;;  %v1014_v63 = vld [vmem:[%s4091_s5 + $0x448] sm:$0xff]  ;;  %p3814_p8 = por %p3813_p5, %p3812_p1 }
  0x87   : > { %1717 = vadd.xlane.f32.xlu1 %v1266_v22  ;;  %v1287_v0 = vadd.f32 %v1031_v61, %v519_v60  ;;  %v1270_v1 = vadd.f32 %v1014_v63, %v502_v62  ;;  %v456_v2 = vld [vmem:[%s4091_s5 + $0x160] sm:$0xff]  ;;  %v968_v3 = vld [vmem:[%s4091_s5 + $0x168] sm:$0xff]  ;;  %v439_v4 = vld [vmem:[%s4091_s5 + $0x50] sm:$0xff] }
  0x88   : > { %1625 = vadd.xlane.f32.xlu0 %v1220_v23  ;;  %v951_v5 = vld [vmem:[%s4091_s5 + $0x58] sm:$0xff]  ;;  %v1224_v6 = vadd.f32 %v968_v3, %v456_v2  ;;  %v520_v8 = vld [vmem:[%s4091_s5 + $0x560] sm:$0xff]  ;;  %v1032_v9 = vld [vmem:[%s4091_s5 + $0x568] sm:$0xff]  ;;  %p3815_p11 = pnand %p3814_p8, %p3808_p13 }
  0x89   : > { %v1207_v7 = vadd.f32 %v951_v5, %v439_v4  ;;  %v503_v10 = vld [vmem:[%s4091_s5 + $0x450] sm:$0xff]  ;;  %v1015_v11 = vld [vmem:[%s4091_s5 + $0x458] sm:$0xff]  ;;  %v1288_v12 = vadd.f32 %v1032_v9, %v520_v8  ;;  %v440_v16 = vld [vmem:[%s4091_s5 + $0x60] sm:$0xff] }
  0x8a   : > { %v1271_v13 = vadd.f32 %v1015_v11, %v503_v10  ;;  %v457_v14 = vld [vmem:[%s4091_s5 + $0x170] sm:$0xff]  ;;  %v969_v15 = vld [vmem:[%s4091_s5 + $0x178] sm:$0xff]  ;;  %v952_v17 = vld [vmem:[%s4091_s5 + $0x68] sm:$0xff] }
  0x8b   : > { %1753 = vadd.xlane.f32.xlu1 %v1284_v28  ;;  %v1225_v18 = vadd.f32 %v969_v15, %v457_v14  ;;  %v1208_v19 = vadd.f32 %v952_v17, %v440_v16  ;;  %v521_v20 = vld [vmem:[%s4091_s5 + $0x570] sm:$0xff]  ;;  %v1033_v21 = vld [vmem:[%s4091_s5 + $0x578] sm:$0xff]  ;;  %v504_v22 = vld [vmem:[%s4091_s5 + $0x460] sm:$0xff] }
  0x8c   : > { %1719 = vadd.xlane.f32.xlu0 %v1267_v29  ;;  %v1016_v23 = vld [vmem:[%s4091_s5 + $0x468] sm:$0xff]  ;;  %v1289_v24 = vadd.f32 %v1033_v21, %v521_v20  ;;  %v458_v26 = vld [vmem:[%s4091_s5 + $0x180] sm:$0xff]  ;;  %v441_v28 = vld [vmem:[%s4091_s5 + $0x70] sm:$0xff] }
  0x8d   : > { %v1272_v25 = vadd.f32 %v1016_v23, %v504_v22  ;;  %v970_v27 = vld [vmem:[%s4091_s5 + $0x188] sm:$0xff]  ;;  %v953_v29 = vld [vmem:[%s4091_s5 + $0x78] sm:$0xff]  ;;  %v522_v32 = vld [vmem:[%s4091_s5 + $0x580] sm:$0xff] }
  0x8e   : > { %v1226_v30 = vadd.f32 %v970_v27, %v458_v26  ;;  %v1209_v31 = vadd.f32 %v953_v29, %v441_v28  ;;  %v1034_v33 = vld [vmem:[%s4091_s5 + $0x588] sm:$0xff]  ;;  %v459_v38 = vld [vmem:[%s4091_s5 + $0x190] sm:$0xff]  ;;  %v971_v39 = vld [vmem:[%s4091_s5 + $0x198] sm:$0xff] }
  0x8f   : > { %1627 = vadd.xlane.f32.xlu1 %v1221_v34  ;;  %v505_v34 = vld [vmem:[%s4091_s5 + $0x470] sm:$0xff]  ;;  %v1290_v36 = vadd.f32 %v1034_v33, %v522_v32  ;;  %v1227_v42 = vadd.f32 %v971_v39, %v459_v38  ;;  %v1035_v45 = vld [vmem:[%s4091_s5 + $0x598] sm:$0xff]  ;;  %v460_v50 = vld [vmem:[%s4091_s5 + $0x1a0] sm:$0xff] }
  0x90   : > { %1593 = vadd.xlane.f32.xlu0 %v1204_v35  ;;  %v1017_v35 = vld [vmem:[%s4091_s5 + $0x478] sm:$0xff]  ;;  %v523_v44 = vld [vmem:[%s4091_s5 + $0x590] sm:$0xff]  ;;  %v972_v51 = vld [vmem:[%s4091_s5 + $0x1a8] sm:$0xff] }
  0x91   : > { %v1273_v37 = vadd.f32 %v1017_v35, %v505_v34  ;;  %v1291_v48 = vadd.f32 %v1035_v45, %v523_v44  ;;  %v1228_v54 = vadd.f32 %v972_v51, %v460_v50  ;;  %v524_v56 = vld [vmem:[%s4091_s5 + $0x5a0] sm:$0xff]  ;;  %v1036_v57 = vld [vmem:[%s4091_s5 + $0x5a8] sm:$0xff]  ;;  %v461_v60 = vld [vmem:[%s4091_s5 + $0x1b0] sm:$0xff] }
  0x92   : > { %v973_v61 = vld [vmem:[%s4091_s5 + $0x1b8] sm:$0xff]  ;;  %v1292_v62 = vadd.f32 %v1036_v57, %v524_v56  ;;  %v444_v63 = vld [vmem:[%s4091_s5 + $0xa0] sm:$0xff]  ;;  %v956_v8 = vld [vmem:[%s4091_s5 + $0xa8] sm:$0xff] }
  0x93   : > { %1755 = vadd.xlane.f32.xlu1 %v1285_v40  ;;  %v442_v40 = vld [vmem:[%s4091_s5 + $0x80] sm:$0xff]  ;;  %v1848_v2 = vld [vmem:[%s4098_s28 + $0x18] sm:$0xff]  ;;  %v1847_v11 = vld [vmem:[%s4098_s28 + $0x10] sm:$0xff]  ;;  %v1229_v16 = vadd.f32 %v973_v61, %v461_v60  ;;  %v1212_v21 = vadd.f32 %v956_v8, %v444_v63 }
  0x94   : > { %1721 = vadd.xlane.f32.xlu0 %v1268_v41  ;;  %v954_v41 = vld [vmem:[%s4091_s5 + $0x88] sm:$0xff]  ;;  %v1852_v5 = vld [vmem:[%s4098_s28 + $0x38] sm:$0xff]  ;;  %v508_v17 = vld [vmem:[%s4091_s5 + $0x4a0] sm:$0xff] }
  0x95   : > { %v1210_v43 = vadd.f32 %v954_v41, %v442_v40  ;;  %v3527_v9 = vpack.c.bf16 %v1852_v5, %v1848_v2  ;;  %v1037_v14 = vld [vmem:[%s4091_s5 + $0x5b8] sm:$0xff]  ;;  %v1020_v26 = vld [vmem:[%s4091_s5 + $0x4a8] sm:$0xff]  ;;  %v1855_v29 = vld [vmem:[%s4098_s28 + $0x50] sm:$0xff] }
  0x96   : > { %v1856_v20 = vld [vmem:[%s4098_s28 + $0x58] sm:$0xff]  ;;  %v974_v32 = vld [vmem:[%s4091_s5 + $0x1c8] sm:$0xff]  ;;  %v445_v35 = vld [vmem:[%s4091_s5 + $0xb0] sm:$0xff]  ;;  %v1276_v39 = vadd.f32 %v1020_v26, %v508_v17 }
  0x97   : > { %1629 = vadd.xlane.f32.xlu1 %v1222_v46  ;;  %v506_v46 = vld [vmem:[%s4091_s5 + $0x480] sm:$0xff]  ;;  %3528 = vmatprep.subr.bf16.mxu1 %v3527_v9  ;;  %v1860_v23 = vld [vmem:[%s4098_s28 + $0x78] sm:$0xff]  ;;  %v1038_v50 = vld [vmem:[%s4091_s5 + $0x5c8] sm:$0xff] }
  0x98   : > { %1595 = vadd.xlane.f32.xlu0 %v1205_v47  ;;  %v1018_v47 = vld [vmem:[%s4091_s5 + $0x488] sm:$0xff]  ;;  %v3531_v27 = vpack.c.bf16 %v1860_v23, %v1856_v20  ;;  %v1864_v38 = vld [vmem:[%s4098_s28 + $0x98] sm:$0xff]  ;;  %v1869_v60 = vld [vmem:[%s4098_s28 + $0xc0] sm:$0xff] }
  0x99   : > { %v1274_v49 = vadd.f32 %v1018_v47, %v506_v46  ;;  %v1868_v41 = vld [vmem:[%s4098_s28 + $0xb8] sm:$0xff]  ;;  %v1863_v47 = vld [vmem:[%s4098_s28 + $0x90] sm:$0xff]  ;;  %v1873_v61 = vld [vmem:[%s4098_s28 + $0xe0] sm:$0xff] }
  0x9a   : > { %v957_v44 = vld [vmem:[%s4091_s5 + $0xb8] sm:$0xff]  ;;  %v3535_v45 = vpack.c.bf16 %v1868_v41, %v1864_v38  ;;  %v1875_v2 = vld [vmem:[%s4098_s28 + $0xf0] sm:$0xff]  ;;  %v1878_v8 = vld [vmem:[%s4098_s28 + $0x108] sm:$0xff] }
  0x9b   : > { %1757 = vadd.xlane.f32.xlu1 %v1286_v52  ;;  %v443_v52 = vld [vmem:[%s4091_s5 + $0x90] sm:$0xff]  ;;  %v1872_v56 = vld [vmem:[%s4098_s28 + $0xd8] sm:$0xff]  ;;  %v1213_v57 = vadd.f32 %v957_v44, %v445_v35  ;;  %v1882_v9 = vld [vmem:[%s4098_s28 + $0x128] sm:$0xff] }
  0x9c   : > { %1723 = vadd.xlane.f32.xlu0 %v1269_v53  ;;  %v955_v53 = vld [vmem:[%s4091_s5 + $0x98] sm:$0xff]  ;;  %v1883_v20 = vld [vmem:[%s4098_s28 + $0x130] sm:$0xff]  ;;  %v1886_v26 = vld [vmem:[%s4098_s28 + $0x148] sm:$0xff] }
  0x9d   : > { %v1211_v55 = vadd.f32 %v955_v53, %v443_v52  ;;  %v509_v53 = vld [vmem:[%s4091_s5 + $0x4b0] sm:$0xff]  ;;  %v1894_v44 = vld [vmem:[%s4098_s28 + $0x188] sm:$0xff] }
  0x9e   : > { %v1891_v38 = vld [vmem:[%s4098_s28 + $0x170] sm:$0xff] }
  0x9f   : > { %1631 = vadd.xlane.f32.xlu1 %v1223_v58  ;;  %v507_v58 = vld [vmem:[%s4091_s5 + $0x490] sm:$0xff] }
  0xa0   : > { %1597 = vadd.xlane.f32.xlu0 %v1206_v59  ;;  %v1019_v59 = vld [vmem:[%s4091_s5 + $0x498] sm:$0xff] }
  0xa1   : > { %v1275_v3 = vadd.f32 %v1019_v59, %v507_v58  ;;  %v1876_v59 = vld [vmem:[%s4098_s28 + $0xf8] sm:$0xff] }
  0xa2   : > { %v3539_v63 = vpack.c.bf16 %v1876_v59, %v1872_v56  ;;  %v1899_v56 = vld [vmem:[%s4098_s28 + $0x1b0] sm:$0xff] }
  0xa3   : > { %1759 = vadd.xlane.f32.xlu1 %v1287_v0  ;;  %v1846_v0 = vld [vmem:[%s4098_s28 + $0x8] sm:$0xff] }
  0xa4   : > { %1725 = vadd.xlane.f32.xlu0 %v1270_v1  ;;  %v1850_v1 = vld [vmem:[%s4098_s28 + $0x28] sm:$0xff] }
  0xa5   : > { %v3399_v4 = vpack.c.bf16 %v1850_v1, %v1846_v0  ;;  %v3413_v0 = vpack.c.bf16 %v1873_v61, %v1869_v60  ;;  %v1871_v1 = vld [vmem:[%s4098_s28 + $0xd0] sm:$0xff] }
  0xa6   : > { %v3541_v5 = vpack.c.bf16 %v1875_v2, %v1871_v1  ;;  %v511_v61 = vld [vmem:[%s4091_s5 + $0x4d0] sm:$0xff] }
  0xa7   : > { %1633 = vadd.xlane.f32.xlu1 %v1224_v6  ;;  %v1845_v6 = vld [vmem:[%s4098_s28] sm:$0xff]  ;;  %3400 = vmatprep.subr.bf16.mxu0 %v3399_v4  ;;  %v975_v4 = vld [vmem:[%s4091_s5 + $0x1d8] sm:$0xff] }
  0xa8   : > { %1599 = vadd.xlane.f32.xlu0 %v1207_v7  ;;  %v1849_v7 = vld [vmem:[%s4098_s28 + $0x20] sm:$0xff] }
  0xa9   : > { %v3401_v10 = vpack.c.bf16 %v1849_v7, %v1845_v6  ;;  %v446_v7 = vld [vmem:[%s4091_s5 + $0xc0] sm:$0xff] }
  0xab   : > { %1761 = vadd.xlane.f32.xlu1 %v1288_v12  ;;  %v1851_v12 = vld [vmem:[%s4098_s28 + $0x30] sm:$0xff]  ;;  %3402 = vmatpush1.bf16.msra.mxu0 %v3401_v10  ;;  %v1880_v10 = vld [vmem:[%s4098_s28 + $0x118] sm:$0xff] }
  0xac   : > { %1727 = vadd.xlane.f32.xlu0 %v1271_v13  ;;  %v525_v13 = vld [vmem:[%s4091_s5 + $0x5b0] sm:$0xff]  ;;  %v3529_v15 = vpack.c.bf16 %v1851_v12, %v1847_v11  ;;  %v3415_v12 = vpack.c.bf16 %v1882_v9, %v1878_v8 }
  0xad   : > { %v1293_v34 = vadd.f32 %v1037_v14, %v525_v13  ;;  %v1884_v13 = vld [vmem:[%s4098_s28 + $0x138] sm:$0xff]  ;;  %v1877_v14 = vld [vmem:[%s4098_s28 + $0x100] sm:$0xff]  ;;  %v1903_v9 = vld [vmem:[%s4098_s28 + $0x1d0] sm:$0xff] }
  0xae   : > { %3530 = vmatpush1.bf16.msra.mxu1 %v3529_v15  ;;  %v1881_v15 = vld [vmem:[%s4098_s28 + $0x120] sm:$0xff]  ;;  %v3543_v17 = vpack.c.bf16 %v1884_v13, %v1880_v10  ;;  %v1907_v10 = vld [vmem:[%s4098_s28 + $0x1f0] sm:$0xff] }
  0xaf   : > { %1635 = vadd.xlane.f32.xlu1 %v1225_v18  ;;  %v1854_v18 = vld [vmem:[%s4098_s28 + $0x48] sm:$0xff]  ;;  %3532 = vmatprep.subr.bf16.mxu1 %v3531_v27  ;;  %v3557_v13 = vpack.c.bf16 %v1907_v10, %v1903_v9 }
  0xb0   : > { %1601 = vadd.xlane.f32.xlu0 %v1208_v19  ;;  %v1858_v19 = vld [vmem:[%s4098_s28 + $0x68] sm:$0xff] }
  0xb1   : > { %v3403_v22 = vpack.c.bf16 %v1858_v19, %v1854_v18  ;;  %v3417_v18 = vpack.c.bf16 %v1881_v15, %v1877_v14  ;;  %v1879_v19 = vld [vmem:[%s4098_s28 + $0x110] sm:$0xff]  ;;  %v1890_v27 = vld [vmem:[%s4098_s28 + $0x168] sm:$0xff]  ;;  %v448_v15 = vld [vmem:[%s4091_s5 + $0xe0] sm:$0xff] }
  0xb2   : > { %v3545_v23 = vpack.c.bf16 %v1883_v20, %v1879_v19 }
  0xb3   : > { %1763 = vadd.xlane.f32.xlu1 %v1289_v24  ;;  %v1853_v24 = vld [vmem:[%s4098_s28 + $0x40] sm:$0xff]  ;;  %3404 = vmatprep.subr.bf16.mxu0 %v3403_v22  ;;  %v1039_v22 = vld [vmem:[%s4091_s5 + $0x5d8] sm:$0xff] }
  0xb4   : > { %1729 = vadd.xlane.f32.xlu0 %v1272_v25  ;;  %v1857_v25 = vld [vmem:[%s4098_s28 + $0x60] sm:$0xff] }
  0xb5   : > { %v3405_v28 = vpack.c.bf16 %v1857_v25, %v1853_v24  ;;  %v510_v25 = vld [vmem:[%s4091_s5 + $0x4c0] sm:$0xff] }
  0xb7   : > { %1637 = vadd.xlane.f32.xlu1 %v1226_v30  ;;  %v1859_v30 = vld [vmem:[%s4098_s28 + $0x70] sm:$0xff]  ;;  %3406 = vmatpush1.bf16.msra.mxu0 %v3405_v28  ;;  %v1888_v28 = vld [vmem:[%s4098_s28 + $0x158] sm:$0xff] }
  0xb8   : > { %1603 = vadd.xlane.f32.xlu0 %v1209_v31  ;;  %v462_v31 = vld [vmem:[%s4091_s5 + $0x1c0] sm:$0xff]  ;;  %v3533_v33 = vpack.c.bf16 %v1859_v30, %v1855_v29  ;;  %v3419_v30 = vpack.c.bf16 %v1890_v27, %v1886_v26  ;;  %v1911_v27 = vld [vmem:[%s4098_s28 + $0x210] sm:$0xff] }
  0xb9   : > { %v1230_v52 = vadd.f32 %v974_v32, %v462_v31  ;;  %v1892_v31 = vld [vmem:[%s4098_s28 + $0x178] sm:$0xff]  ;;  %v1885_v32 = vld [vmem:[%s4098_s28 + $0x140] sm:$0xff] }
  0xba   : > { %3534 = vmatpush1.bf16.msra.mxu1 %v3533_v33  ;;  %v1889_v33 = vld [vmem:[%s4098_s28 + $0x160] sm:$0xff]  ;;  %v3547_v35 = vpack.c.bf16 %v1892_v31, %v1888_v28  ;;  %v1915_v28 = vld [vmem:[%s4098_s28 + $0x230] sm:$0xff] }
  0xbb   : > { %1765 = vadd.xlane.f32.xlu1 %v1290_v36  ;;  %v1862_v36 = vld [vmem:[%s4098_s28 + $0x88] sm:$0xff]  ;;  %3536 = vmatprep.subr.bf16.mxu1 %v3535_v45  ;;  %v3561_v31 = vpack.c.bf16 %v1915_v28, %v1911_v27 }
  0xbc   : > { %1731 = vadd.xlane.f32.xlu0 %v1273_v37  ;;  %v1866_v37 = vld [vmem:[%s4098_s28 + $0xa8] sm:$0xff] }
  0xbd   : > { %v3407_v40 = vpack.c.bf16 %v1866_v37, %v1862_v36  ;;  %v3421_v36 = vpack.c.bf16 %v1889_v33, %v1885_v32  ;;  %v1887_v37 = vld [vmem:[%s4098_s28 + $0x150] sm:$0xff]  ;;  %v1898_v45 = vld [vmem:[%s4098_s28 + $0x1a8] sm:$0xff]  ;;  %v512_v33 = vld [vmem:[%s4091_s5 + $0x4e0] sm:$0xff] }
  0xbe   : > { %v3549_v41 = vpack.c.bf16 %v1891_v38, %v1887_v37 }
  0xbf   : > { %1639 = vadd.xlane.f32.xlu1 %v1227_v42  ;;  %v1861_v42 = vld [vmem:[%s4098_s28 + $0x80] sm:$0xff]  ;;  %3408 = vmatprep.subr.bf16.mxu0 %v3407_v40  ;;  %v976_v40 = vld [vmem:[%s4091_s5 + $0x1e8] sm:$0xff] }
  0xc0   : > { %1605 = vadd.xlane.f32.xlu0 %v1210_v43  ;;  %v1865_v43 = vld [vmem:[%s4098_s28 + $0xa0] sm:$0xff] }
  0xc1   : > { %v3409_v46 = vpack.c.bf16 %v1865_v43, %v1861_v42  ;;  %v447_v43 = vld [vmem:[%s4091_s5 + $0xd0] sm:$0xff] }
  0xc3   : > { %1767 = vadd.xlane.f32.xlu1 %v1291_v48  ;;  %v1867_v48 = vld [vmem:[%s4098_s28 + $0xb0] sm:$0xff]  ;;  %3410 = vmatpush1.bf16.msra.mxu0 %v3409_v46  ;;  %v1896_v46 = vld [vmem:[%s4098_s28 + $0x198] sm:$0xff] }
  0xc4   : > { %1733 = vadd.xlane.f32.xlu0 %v1274_v49  ;;  %v526_v49 = vld [vmem:[%s4091_s5 + $0x5c0] sm:$0xff]  ;;  %v3537_v51 = vpack.c.bf16 %v1867_v48, %v1863_v47  ;;  %v3423_v48 = vpack.c.bf16 %v1898_v45, %v1894_v44  ;;  %v1919_v45 = vld [vmem:[%s4098_s28 + $0x250] sm:$0xff] }
  0xc5   : > { %v1294_v6 = vadd.f32 %v1038_v50, %v526_v49  ;;  %v1900_v49 = vld [vmem:[%s4098_s28 + $0x1b8] sm:$0xff]  ;;  %v1893_v50 = vld [vmem:[%s4098_s28 + $0x180] sm:$0xff] }
  0xc6   : > { %3538 = vmatpush1.bf16.msra.mxu1 %v3537_v51  ;;  %v1897_v51 = vld [vmem:[%s4098_s28 + $0x1a0] sm:$0xff] }
  0xc7   : > { %1641 = vadd.xlane.f32.xlu1 %v1228_v54  ;;  %v1870_v54 = vld [vmem:[%s4098_s28 + $0xc8] sm:$0xff]  ;;  %3540 = vmatprep.subr.bf16.mxu1 %v3539_v63 }
  0xc8   : > { %1607 = vadd.xlane.f32.xlu0 %v1211_v55  ;;  %v1874_v55 = vld [vmem:[%s4098_s28 + $0xe8] sm:$0xff] }
  0xc9   : > { %v3411_v58 = vpack.c.bf16 %v1874_v55, %v1870_v54  ;;  %v3425_v54 = vpack.c.bf16 %v1897_v51, %v1893_v50  ;;  %v1895_v55 = vld [vmem:[%s4098_s28 + $0x190] sm:$0xff]  ;;  %v1906_v63 = vld [vmem:[%s4098_s28 + $0x1e8] sm:$0xff] }
  0xca   : > { %3542 = vmatpush1.bf16.msra.mxu1 %v3541_v5  ;;  %v3553_v59 = vpack.c.bf16 %v1899_v56, %v1895_v55  ;;  %v1905_v5 = vld [vmem:[%s4098_s28 + $0x1e0] sm:$0xff]  ;;  %v449_v51 = vld [vmem:[%s4091_s5 + $0xf0] sm:$0xff] }
  0xcb   : > { %1769 = vadd.xlane.f32.xlu1 %v1292_v62  ;;  %v1021_v62 = vld [vmem:[%s4091_s5 + $0x4b8] sm:$0xff]  ;;  %3412 = vmatprep.subr.bf16.mxu0 %v3411_v58  ;;  %v1040_v58 = vld [vmem:[%s4091_s5 + $0x5e8] sm:$0xff] }
  0xcc   : > { %1735 = vadd.xlane.f32.xlu0 %v1275_v3  ;;  %v463_v3 = vld [vmem:[%s4091_s5 + $0x1d0] sm:$0xff]  ;;  %v1277_v11 = vadd.f32 %v1021_v62, %v509_v53  ;;  %3414 = vmatpush1.bf16.msra.mxu0 %v3413_v0  ;;  %v3551_v53 = vpack.c.bf16 %v1900_v49, %v1896_v46  ;;  %v1902_v62 = vld [vmem:[%s4098_s28 + $0x1c8] sm:$0xff]  ;;  %v1904_v0 = vld [vmem:[%s4098_s28 + $0x1d8] sm:$0xff] }
  0xcd   : > { %3416 = vmatprep.subr.bf16.mxu0 %v3415_v12  ;;  %v1231_v24 = vadd.f32 %v975_v4, %v463_v3  ;;  %3544 = vmatprep.subr.bf16.mxu1 %v3543_v17  ;;  %v3427_v2 = vpack.c.bf16 %v1906_v63, %v1902_v62  ;;  %v1908_v3 = vld [vmem:[%s4098_s28 + $0x1f8] sm:$0xff]  ;;  %v1901_v4 = vld [vmem:[%s4098_s28 + $0x1c0] sm:$0xff]  ;;  %v1914_v17 = vld [vmem:[%s4098_s28 + $0x228] sm:$0xff] }
  0xce   : > { %3546 = vmatpush1.bf16.msra.mxu1 %v3545_v23  ;;  %v3429_v8 = vpack.c.bf16 %v1905_v5, %v1901_v4  ;;  %v977_v12 = vld [vmem:[%s4091_s5 + $0x1f8] sm:$0xff]  ;;  %v1913_v23 = vld [vmem:[%s4098_s28 + $0x220] sm:$0xff]  ;;  %v1923_v46 = vld [vmem:[%s4098_s28 + $0x270] sm:$0xff] }
  0xcf   : > { %1643 = vadd.xlane.f32.xlu1 %v1229_v16  ;;  %v958_v16 = vld [vmem:[%s4091_s5 + $0xc8] sm:$0xff]  ;;  %3548 = vmatprep.subr.bf16.mxu1 %v3547_v35  ;;  %v3565_v49 = vpack.c.bf16 %v1923_v46, %v1919_v45  ;;  %v1927_v63 = vld [vmem:[%s4098_s28 + $0x290] sm:$0xff]  ;;  %v482_v5 = vld [vmem:[%s4091_s5 + $0x300] sm:$0xff] }
  0xd0   : > { %1609 = vadd.xlane.f32.xlu0 %v1212_v21  ;;  %v527_v21 = vld [vmem:[%s4091_s5 + $0x5d0] sm:$0xff]  ;;  %v1214_v29 = vadd.f32 %v958_v16, %v446_v7  ;;  %3418 = vmatpush1.bf16.msra.mxu0 %v3417_v18  ;;  %v3555_v7 = vpack.c.bf16 %v1908_v3, %v1904_v0  ;;  %v1910_v16 = vld [vmem:[%s4098_s28 + $0x208] sm:$0xff]  ;;  %v1912_v18 = vld [vmem:[%s4098_s28 + $0x218] sm:$0xff] }
  0xd1   : > { %3420 = vmatprep.subr.bf16.mxu0 %v3419_v30  ;;  %v1295_v42 = vadd.f32 %v1039_v22, %v527_v21  ;;  %v3431_v20 = vpack.c.bf16 %v1914_v17, %v1910_v16  ;;  %v1916_v21 = vld [vmem:[%s4098_s28 + $0x238] sm:$0xff]  ;;  %v1909_v22 = vld [vmem:[%s4098_s28 + $0x200] sm:$0xff]  ;;  %v1922_v35 = vld [vmem:[%s4098_s28 + $0x268] sm:$0xff] }
  0xd2   : > { %3550 = vmatpush1.bf16.msra.mxu1 %v3549_v41  ;;  %v3433_v26 = vpack.c.bf16 %v1913_v23, %v1909_v22  ;;  %v1041_v30 = vld [vmem:[%s4091_s5 + $0x5f8] sm:$0xff]  ;;  %v1921_v41 = vld [vmem:[%s4098_s28 + $0x260] sm:$0xff]  ;;  %v1931_v0 = vld [vmem:[%s4098_s28 + $0x2b0] sm:$0xff] }
  0xd3   : > { %1771 = vadd.xlane.f32.xlu1 %v1293_v34  ;;  %v1022_v34 = vld [vmem:[%s4091_s5 + $0x4c8] sm:$0xff]  ;;  %3552 = vmatprep.subr.bf16.mxu1 %v3551_v53  ;;  %v3569_v3 = vpack.c.bf16 %v1931_v0, %v1927_v63  ;;  %v1935_v17 = vld [vmem:[%s4098_s28 + $0x2d0] sm:$0xff]  ;;  %v546_v23 = vld [vmem:[%s4091_s5 + $0x700] sm:$0xff] }
  0xd4   : > { %1737 = vadd.xlane.f32.xlu0 %v1276_v39  ;;  %v464_v39 = vld [vmem:[%s4091_s5 + $0x1e0] sm:$0xff]  ;;  %v1278_v47 = vadd.f32 %v1022_v34, %v510_v25  ;;  %3422 = vmatpush1.bf16.msra.mxu0 %v3421_v36  ;;  %v3559_v25 = vpack.c.bf16 %v1916_v21, %v1912_v18  ;;  %v1918_v34 = vld [vmem:[%s4098_s28 + $0x248] sm:$0xff]  ;;  %v1920_v36 = vld [vmem:[%s4098_s28 + $0x258] sm:$0xff] }
  0xd5   : > { %3424 = vmatprep.subr.bf16.mxu0 %v3423_v48  ;;  %v1232_v60 = vadd.f32 %v976_v40, %v464_v39  ;;  %v3435_v38 = vpack.c.bf16 %v1922_v35, %v1918_v34  ;;  %v1924_v39 = vld [vmem:[%s4098_s28 + $0x278] sm:$0xff]  ;;  %v1917_v40 = vld [vmem:[%s4098_s28 + $0x240] sm:$0xff]  ;;  %v1930_v53 = vld [vmem:[%s4098_s28 + $0x2a8] sm:$0xff] }
  0xd6   : > { %3554 = vmatpush1.bf16.msra.mxu1 %v3553_v59  ;;  %v3437_v44 = vpack.c.bf16 %v1921_v41, %v1917_v40  ;;  %v1025_v48 = vld [vmem:[%s4091_s5 + $0x4f8] sm:$0xff]  ;;  %v1929_v59 = vld [vmem:[%s4098_s28 + $0x2a0] sm:$0xff]  ;;  %v1939_v18 = vld [vmem:[%s4098_s28 + $0x2f0] sm:$0xff] }
  0xd7   : > { %1645 = vadd.xlane.f32.xlu1 %v1230_v52  ;;  %v959_v52 = vld [vmem:[%s4091_s5 + $0xd8] sm:$0xff]  ;;  %3556 = vmatprep.subr.bf16.mxu1 %v3555_v7  ;;  %v1938_v7 = vld [vmem:[%s4098_s28 + $0x2e8] sm:$0xff]  ;;  %v3573_v21 = vpack.c.bf16 %v1939_v18, %v1935_v17  ;;  %v1943_v35 = vld [vmem:[%s4098_s28 + $0x310] sm:$0xff] }
  0xd8   : > { %1611 = vadd.xlane.f32.xlu0 %v1213_v57  ;;  %v528_v57 = vld [vmem:[%s4091_s5 + $0x5e0] sm:$0xff]  ;;  %v1215_v1 = vadd.f32 %v959_v52, %v447_v43  ;;  %3426 = vmatpush1.bf16.msra.mxu0 %v3425_v54  ;;  %v3563_v43 = vpack.c.bf16 %v1924_v39, %v1920_v36  ;;  %v1926_v52 = vld [vmem:[%s4098_s28 + $0x288] sm:$0xff]  ;;  %v1928_v54 = vld [vmem:[%s4098_s28 + $0x298] sm:$0xff] }
  0xd9   : > { %3428 = vmatprep.subr.bf16.mxu0 %v3427_v2  ;;  %v1296_v14 = vadd.f32 %v1040_v58, %v528_v57  ;;  %v3439_v56 = vpack.c.bf16 %v1930_v53, %v1926_v52  ;;  %v1932_v57 = vld [vmem:[%s4098_s28 + $0x2b8] sm:$0xff]  ;;  %v1925_v58 = vld [vmem:[%s4098_s28 + $0x280] sm:$0xff]  ;;  %v1947_v36 = vld [vmem:[%s4098_s28 + $0x330] sm:$0xff] }
  0xda   : > { %3558 = vmatpush1.bf16.msra.mxu1 %v3557_v13  ;;  %v3441_v62 = vpack.c.bf16 %v1929_v59, %v1925_v58  ;;  %v995_v2 = vld [vmem:[%s4091_s5 + $0x318] sm:$0xff]  ;;  %v1937_v13 = vld [vmem:[%s4098_s28 + $0x2e0] sm:$0xff]  ;;  %v3577_v39 = vpack.c.bf16 %v1947_v36, %v1943_v35  ;;  %v1951_v53 = vld [vmem:[%s4098_s28 + $0x350] sm:$0xff] }
  0xdb   : > { %1773 = vadd.xlane.f32.xlu1 %v1294_v6  ;;  %v1023_v6 = vld [vmem:[%s4091_s5 + $0x4d8] sm:$0xff]  ;;  %3560 = vmatprep.subr.bf16.mxu1 %v3559_v25  ;;  %v1946_v25 = vld [vmem:[%s4098_s28 + $0x328] sm:$0xff]  ;;  %v466_v41 = vld [vmem:[%s4091_s5 + $0x200] sm:$0xff] }
  0xdc   : > { %1739 = vadd.xlane.f32.xlu0 %v1277_v11  ;;  %v465_v11 = vld [vmem:[%s4091_s5 + $0x1f0] sm:$0xff]  ;;  %v1279_v19 = vadd.f32 %v1023_v6, %v511_v61  ;;  %3430 = vmatpush1.bf16.msra.mxu0 %v3429_v8  ;;  %v3567_v61 = vpack.c.bf16 %v1932_v57, %v1928_v54  ;;  %v1934_v6 = vld [vmem:[%s4098_s28 + $0x2c8] sm:$0xff]  ;;  %v1936_v8 = vld [vmem:[%s4098_s28 + $0x2d8] sm:$0xff] }
  0xdd   : > { %3432 = vmatprep.subr.bf16.mxu0 %v3431_v20  ;;  %v1233_v32 = vadd.f32 %v977_v12, %v465_v11  ;;  %v3443_v10 = vpack.c.bf16 %v1938_v7, %v1934_v6  ;;  %v1940_v11 = vld [vmem:[%s4098_s28 + $0x2f8] sm:$0xff]  ;;  %v1933_v12 = vld [vmem:[%s4098_s28 + $0x2c0] sm:$0xff]  ;;  %v1955_v54 = vld [vmem:[%s4098_s28 + $0x370] sm:$0xff] }
  0xde   : > { %3562 = vmatpush1.bf16.msra.mxu1 %v3561_v31  ;;  %v3445_v16 = vpack.c.bf16 %v1937_v13, %v1933_v12  ;;  %v1059_v20 = vld [vmem:[%s4091_s5 + $0x718] sm:$0xff]  ;;  %v1945_v31 = vld [vmem:[%s4098_s28 + $0x320] sm:$0xff]  ;;  %v3581_v57 = vpack.c.bf16 %v1955_v54, %v1951_v53  ;;  %v1970_v17 = vld [vmem:[%s4098_s28 + $0x3e8] sm:$0xff] }
  0xdf   : > { %1647 = vadd.xlane.f32.xlu1 %v1231_v24  ;;  %v960_v24 = vld [vmem:[%s4091_s5 + $0xe8] sm:$0xff]  ;;  %3564 = vmatprep.subr.bf16.mxu1 %v3563_v43  ;;  %v484_v59 = vld [vmem:[%s4091_s5 + $0x320] sm:$0xff]  ;;  %v1960_v63 = vld [vmem:[%s4098_s28 + $0x398] sm:$0xff] }
  0xe0   : > { %1613 = vadd.xlane.f32.xlu0 %v1214_v29  ;;  %v529_v29 = vld [vmem:[%s4091_s5 + $0x5f0] sm:$0xff]  ;;  %v1216_v37 = vadd.f32 %v960_v24, %v448_v15  ;;  %3434 = vmatpush1.bf16.msra.mxu0 %v3433_v26  ;;  %v3571_v15 = vpack.c.bf16 %v1940_v11, %v1936_v8  ;;  %v1942_v24 = vld [vmem:[%s4098_s28 + $0x308] sm:$0xff]  ;;  %v1944_v26 = vld [vmem:[%s4098_s28 + $0x318] sm:$0xff] }
  0xe1   : > { %3436 = vmatprep.subr.bf16.mxu0 %v3435_v38  ;;  %v1297_v50 = vadd.f32 %v1041_v30, %v529_v29  ;;  %v3447_v28 = vpack.c.bf16 %v1946_v25, %v1942_v24  ;;  %v1948_v29 = vld [vmem:[%s4098_s28 + $0x338] sm:$0xff]  ;;  %v1941_v30 = vld [vmem:[%s4098_s28 + $0x300] sm:$0xff]  ;;  %v1954_v43 = vld [vmem:[%s4098_s28 + $0x368] sm:$0xff] }
  0xe2   : > { %3566 = vmatpush1.bf16.msra.mxu1 %v3565_v49  ;;  %v3449_v34 = vpack.c.bf16 %v1945_v31, %v1941_v30  ;;  %v979_v38 = vld [vmem:[%s4091_s5 + $0x218] sm:$0xff]  ;;  %v1953_v49 = vld [vmem:[%s4098_s28 + $0x360] sm:$0xff]  ;;  %v1959_v8 = vld [vmem:[%s4098_s28 + $0x390] sm:$0xff] }
  0xe3   : > { %1775 = vadd.xlane.f32.xlu1 %v1295_v42  ;;  %v1024_v42 = vld [vmem:[%s4091_s5 + $0x4e8] sm:$0xff]  ;;  %3568 = vmatprep.subr.bf16.mxu1 %v3567_v61  ;;  %v1968_v18 = vld [vmem:[%s4098_s28 + $0x3d8] sm:$0xff]  ;;  %v1971_v30 = vld [vmem:[%s4098_s28 + $0x3f0] sm:$0xff] }
  0xe4   : > { %1741 = vadd.xlane.f32.xlu0 %v1278_v47  ;;  %v513_v47 = vld [vmem:[%s4091_s5 + $0x4f0] sm:$0xff]  ;;  %v1280_v55 = vadd.f32 %v1024_v42, %v512_v33  ;;  %3438 = vmatpush1.bf16.msra.mxu0 %v3437_v44  ;;  %v3575_v33 = vpack.c.bf16 %v1948_v29, %v1944_v26  ;;  %v1950_v42 = vld [vmem:[%s4098_s28 + $0x348] sm:$0xff]  ;;  %v1952_v44 = vld [vmem:[%s4098_s28 + $0x358] sm:$0xff] }
  0xe5   : > { %3440 = vmatprep.subr.bf16.mxu0 %v3439_v56  ;;  %v1281_v4 = vadd.f32 %v1025_v48, %v513_v47  ;;  %v3451_v46 = vpack.c.bf16 %v1954_v43, %v1950_v42  ;;  %v1956_v47 = vld [vmem:[%s4098_s28 + $0x378] sm:$0xff]  ;;  %v1949_v48 = vld [vmem:[%s4098_s28 + $0x340] sm:$0xff]  ;;  %v1042_v56 = vld [vmem:[%s4091_s5 + $0x608] sm:$0xff] }
  0xe6   : > { %3570 = vmatpush1.bf16.msra.mxu1 %v3569_v3  ;;  %v3453_v52 = vpack.c.bf16 %v1953_v49, %v1949_v48  ;;  %v1958_v61 = vld [vmem:[%s4098_s28 + $0x388] sm:$0xff]  ;;  %v1957_v3 = vld [vmem:[%s4098_s28 + $0x380] sm:$0xff]  ;;  %v1043_v25 = vld [vmem:[%s4091_s5 + $0x618] sm:$0xff] }
  0xe7   : > { %1649 = vadd.xlane.f32.xlu1 %v1232_v60  ;;  %v961_v60 = vld [vmem:[%s4091_s5 + $0xf8] sm:$0xff]  ;;  %3572 = vmatprep.subr.bf16.mxu1 %v3571_v15  ;;  %v1060_v11 = vld [vmem:[%s4091_s5 + $0x728] sm:$0xff]  ;;  %v531_v15 = vld [vmem:[%s4091_s5 + $0x610] sm:$0xff] }
  0xe8   : > { %1615 = vadd.xlane.f32.xlu0 %v1215_v1  ;;  %v483_v1 = vld [vmem:[%s4091_s5 + $0x310] sm:$0xff]  ;;  %v1217_v9 = vadd.f32 %v961_v60, %v449_v51  ;;  %3442 = vmatpush1.bf16.msra.mxu0 %v3441_v62  ;;  %v3579_v51 = vpack.c.bf16 %v1956_v47, %v1952_v44  ;;  %v2103_v60 = vlaneseq  ;;  %v1962_v62 = vld [vmem:[%s4098_s28 + $0x3a8] sm:$0xff]  ;;  %v997_v36 = vld [vmem:[%s4091_s5 + $0x338] sm:$0xff] }
  0xe9   : > { %3444 = vmatprep.subr.bf16.mxu0 %v3443_v10  ;;  %v1251_v22 = vadd.f32 %v995_v2, %v483_v1  ;;  %v3455_v1 = vpack.c.bf16 %v1962_v62, %v1958_v61  ;;  %v1964_v2 = vld [vmem:[%s4098_s28 + $0x3b8] sm:$0xff]  ;;  %v548_v10 = vld [vmem:[%s4091_s5 + $0x720] sm:$0xff]  ;;  %v1967_v29 = vld [vmem:[%s4098_s28 + $0x3d0] sm:$0xff] }
  0xea   : > { %3574 = vmatpush1.bf16.msra.mxu1 %v3573_v21  ;;  %v3583_v6 = vpack.c.bf16 %v1964_v2, %v1960_v63  ;;  %v1972_v21 = vld [vmem:[%s4098_s28 + $0x3f8] sm:$0xff]  ;;  %v4383_v24 = vshrl.u32 %v2103_v60, 7  ;;  %v3589_v31 = vpack.c.bf16 %v1971_v30, %v1967_v29  ;;  %v485_v35 = vld [vmem:[%s4091_s5 + $0x330] sm:$0xff]  ;;  %v998_v61 = vld [vmem:[%s4091_s5 + $0x348] sm:$0xff] }
  0xeb   : > { %1777 = vadd.xlane.f32.xlu1 %v1296_v14  ;;  %v994_v14 = vld [vmem:[%s4091_s5 + $0x308] sm:$0xff]  ;;  %3576 = vmatprep.subr.bf16.mxu1 %v3575_v33  ;;  %v1253_v42 = vadd.f32 %v997_v36, %v485_v35  ;;  %v551_v35 = vld [vmem:[%s4091_s5 + $0x750] sm:$0xff]  ;;  %v1063_v36 = vld [vmem:[%s4091_s5 + $0x758] sm:$0xff] }
  0xec   : > { %1743 = vadd.xlane.f32.xlu0 %v1279_v19  ;;  %v547_v19 = vld [vmem:[%s4091_s5 + $0x710] sm:$0xff]  ;;  %v1250_v27 = vadd.f32 %v994_v14, %v482_v5  ;;  %3446 = vmatpush1.bf16.msra.mxu0 %v3445_v16  ;;  %v996_v5 = vld [vmem:[%s4091_s5 + $0x328] sm:$0xff]  ;;  %v4374_v14 = vand.u32 127, %v2103_v60  ;;  %v486_v60 = vld [vmem:[%s4091_s5 + $0x340] sm:$0xff] }
  0xed   : > { %3448 = vmatprep.subr.bf16.mxu0 %v3447_v28  ;;  %v1315_v40 = vadd.f32 %v1059_v20, %v547_v19  ;;  %v1966_v16 = vld [vmem:[%s4098_s28 + $0x3c8] sm:$0xff]  ;;  %v1252_v19 = vadd.f32 %v996_v5, %v484_v59 }
  0xee   : > { %3578 = vmatpush1.bf16.msra.mxu1 %v3577_v39  ;;  %v3459_v20 = vpack.c.bf16 %v1970_v17, %v1966_v16  ;;  %v2257_v26 = vadd.s32 4294967288, %v4374_v14  ;;  %v2264_v54 = vadd.s32 4294967280, %v4374_v14 }
  0xef   : > { %1651 = vadd.xlane.f32.xlu1 %v1233_v32  ;;  %v1058_v32 = vld [vmem:[%s4091_s5 + $0x708] sm:$0xff]  ;;  %3580 = vmatprep.subr.bf16.mxu1 %v3579_v51 }
  0xf0   : > { %1617 = vadd.xlane.f32.xlu0 %v1216_v37  ;;  %v467_v37 = vld [vmem:[%s4091_s5 + $0x210] sm:$0xff]  ;;  %v1314_v45 = vadd.f32 %v1058_v32, %v546_v23  ;;  %3450 = vmatpush1.bf16.msra.mxu0 %v3449_v34  ;;  %v1969_v23 = vld [vmem:[%s4098_s28 + $0x3e0] sm:$0xff]  ;;  %v1316_v32 = vadd.f32 %v1060_v11, %v548_v10  ;;  %v1299_v34 = vadd.f32 %v1043_v25, %v531_v15  ;;  %v1044_v51 = vld [vmem:[%s4091_s5 + $0x628] sm:$0xff] }
  0xf1   : > { %3452 = vmatprep.subr.bf16.mxu0 %v3451_v46  ;;  %v1235_v58 = vadd.f32 %v979_v38, %v467_v37  ;;  %v4393_v37 = vsub.s32 %v4374_v14, %v4383_v24  ;;  %v4396_v39 = vsub.s32 %v2257_v26, %v4383_v24  ;;  %v1061_v46 = vld [vmem:[%s4091_s5 + $0x738] sm:$0xff]  ;;  %v533_v11 = vld [vmem:[%s4091_s5 + $0x630] sm:$0xff]  ;;  %v470_v26 = vld [vmem:[%s4091_s5 + $0x240] sm:$0xff] }
  0xf2   : > { %3582 = vmatpush1.bf16.msra.mxu1 %v3581_v57 }
  0xf3   : > { %1779 = vadd.xlane.f32.xlu1 %v1297_v50  ;;  %v978_v50 = vld [vmem:[%s4091_s5 + $0x208] sm:$0xff]  ;;  %3584 = vmatprep.subr.bf16.mxu1 %v3583_v6 }
  0xf4   : > { %1745 = vadd.xlane.f32.xlu0 %v1280_v55  ;;  %v530_v55 = vld [vmem:[%s4091_s5 + $0x600] sm:$0xff]  ;;  %v1234_v0 = vadd.f32 %v978_v50, %v466_v41  ;;  %3454 = vmatpush1.bf16.msra.mxu0 %v3453_v52  ;;  %v980_v41 = vld [vmem:[%s4091_s5 + $0x228] sm:$0xff] }
  0xf5   : > { %3456 = vmatprep.subr.bf16.mxu0 %v3455_v1  ;;  %v1298_v13 = vadd.f32 %v1042_v56, %v530_v55  ;;  %v532_v50 = vld [vmem:[%s4091_s5 + $0x620] sm:$0xff]  ;;  %v981_v1 = vld [vmem:[%s4091_s5 + $0x238] sm:$0xff] }
  0xf6   : > { %v1300_v59 = vadd.f32 %v1044_v51, %v532_v50  ;;  %v488_v50 = vld [vmem:[%s4091_s5 + $0x360] sm:$0xff]  ;;  %v1000_v51 = vld [vmem:[%s4091_s5 + $0x368] sm:$0xff] }
  0xf7   : > { %1747 = vadd.xlane.f32.xlu1 %v1281_v4  ;;  %v1961_v4 = vld [vmem:[%s4098_s28 + $0x3a0] sm:$0xff] }
  0xf8   : > { %1619 = vadd.xlane.f32.xlu0 %v1217_v9  ;;  %v3457_v7 = vpack.c.bf16 %v1961_v4, %v1957_v3  ;;  %v1963_v9 = vld [vmem:[%s4098_s28 + $0x3b0] sm:$0xff]  ;;  %v4418_v3 = vsub.s32 %v2264_v54, %v4383_v24  ;;  %v1254_v4 = vadd.f32 %v998_v61, %v486_v60 }
  0xf9   : > { %v3585_v12 = vpack.c.bf16 %v1963_v9, %v1959_v8  ;;  %v550_v8 = vld [vmem:[%s4091_s5 + $0x740] sm:$0xff]  ;;  %v1062_v9 = vld [vmem:[%s4091_s5 + $0x748] sm:$0xff] }
  0xfa   : > { %3458 = vmatpush1.bf16.msra.mxu0 %v3457_v7  ;;  %v1318_v16 = vadd.f32 %v1062_v9, %v550_v8 }
  0xfb   : > { %1687 = vadd.xlane.f32.xlu1 %v1251_v22  ;;  %v1965_v22 = vld [vmem:[%s4098_s28 + $0x3c0] sm:$0xff]  ;;  %3586 = vmatpush1.bf16.msra.mxu1 %v3585_v12  ;;  %v1045_v12 = vld [vmem:[%s4091_s5 + $0x638] sm:$0xff] }
  0xfc   : > { %1685 = vadd.xlane.f32.xlu0 %v1250_v27  ;;  %v3587_v27 = vpack.c.bf16 %v1972_v21, %v1968_v18  ;;  %v3461_v28 = vpack.c.bf16 %v1969_v23, %v1965_v22  ;;  %3460 = vmatprep.subr.bf16.mxu0 %v3459_v20  ;;  %v487_v20 = vld [vmem:[%s4091_s5 + $0x350] sm:$0xff]  ;;  %v999_v21 = vld [vmem:[%s4091_s5 + $0x358] sm:$0xff] }
  0xfe   : > { %3588 = vmatprep.subr.bf16.mxu1 %v3587_v27  ;;  %3462 = vmatpush1.bf16.msra.mxu0 %v3461_v28  ;;  %v982_v27 = vld [vmem:[%s4091_s5 + $0x248] sm:$0xff] }
  0xff   : > { %1815 = vadd.xlane.f32.xlu1 %v1315_v40  ;;  %v468_v40 = vld [vmem:[%s4091_s5 + $0x220] sm:$0xff]  ;;  %3590 = vmatpush1.bf16.msra.mxu1 %v3589_v31  ;;  %v1255_v31 = vadd.f32 %v999_v21, %v487_v20  ;;  %v984_v20 = vld [vmem:[%s4091_s5 + $0x268] sm:$0xff] }
 0x100   : > { %1813 = vadd.xlane.f32.xlu0 %v1314_v45  ;;  %v1236_v44 = vadd.f32 %v980_v41, %v468_v40  ;;  %v549_v45 = vld [vmem:[%s4091_s5 + $0x730] sm:$0xff]  ;;  %v534_v41 = vld [vmem:[%s4091_s5 + $0x640] sm:$0xff] }
 0x101   : > { %v1317_v56 = vadd.f32 %v1061_v46, %v549_v45  ;;  %v1319_v46 = vadd.f32 %v1063_v36, %v551_v35  ;;  %v2292_v35 = vadd.s32 4294967248, %v4374_v14 }
 0x103   : > { %1655 = vadd.xlane.f32.xlu1 %v1235_v58 }
 0x104   : > { %1653 = vadd.xlane.f32.xlu0 %v1234_v0  ;;  %v469_v0 = vld [vmem:[%s4091_s5 + $0x230] sm:$0xff] }
 0x105   : > { %v1237_v7 = vadd.f32 %v981_v1, %v469_v0  ;;  %v1064_v0 = vld [vmem:[%s4091_s5 + $0x768] sm:$0xff] }
 0x107   : > { %1781 = vadd.xlane.f32.xlu1 %v1298_v13  ;;  %v2271_v13 = vadd.s32 4294967272, %v4374_v14 }
 0x108   : > { %1689 = vadd.xlane.f32.xlu0 %v1252_v19  ;;  %v1750_v33 = vpop.xlane.xlu1 %1749  ;;  %v1301_v19 = vadd.f32 %v1045_v12, %v533_v11 }
 0x109   : > { %v1622_v38 = vpop.xlane.xlu0 %1621  ;;  %v2681_v47 = vrot.slane %v1750_v33, %v4393_v37  ;;  %v4432_v25 = vsub.s32 %v2271_v13, %v4383_v24  ;;  %v489_v13 = vld [vmem:[%s4091_s5 + $0x370] sm:$0xff] }
 0x10a   : > { %v2365_v52 = vrot.slane %v1622_v38, %v4393_v37 }
 0x10b   : > { %1817 = vadd.xlane.f32.xlu1 %v1316_v32 }
 0x10c   : > { %1783 = vadd.xlane.f32.xlu0 %v1299_v34  ;;  %v1752_v43 = vpop.xlane.xlu1 %1751  ;;  %v1238_v34 = vadd.f32 %v982_v27, %v470_v26 }
 0x10d   : > { %v2685_v48 = vrot.slane %v1752_v43, %v4396_v39  ;;  %v1624_v49 = vpop.xlane.xlu0 %1623  ;;  %v2278_v43 = vadd.s32 4294967264, %v4374_v14 }
 0x10e   : > { %v2369_v53 = vrot.slane %v1624_v49, %v4396_v39 }
 0x10f   : > { %v2686_v55 = vsel %vm2262_vm0, %v2685_v48, %v2681_v47  ;;  %1691 = vadd.xlane.f32.xlu1 %v1253_v42  ;;  %v1046_v42 = vld [vmem:[%s4091_s5 + $0x648] sm:$0xff]  ;;  %v4453_v54 = vsub.s32 %v2278_v43, %v4383_v24 }
 0x110   : > { %v2370_v57 = vsel %vm2262_vm0, %v2369_v53, %v2365_v52  ;;  %1657 = vadd.xlane.f32.xlu0 %v1236_v44  ;;  %v1592_v58 = vpop.xlane.xlu1 %1591  ;;  %v1302_v49 = vadd.f32 %v1046_v42, %v534_v41 }
 0x111   : > { %v2261_v62 = vrot.slane %v1592_v58, %v4396_v39  ;;  %v1590_v63 = vpop.xlane.xlu0 %1589 }
 0x112   : > { %v2256_v2 = vrot.slane %v1590_v63, %v4393_v37  ;;  %v552_v63 = vld [vmem:[%s4091_s5 + $0x760] sm:$0xff] }
 0x113   : > { %1819 = vadd.xlane.f32.xlu1 %v1317_v56  ;;  %v983_v56 = vld [vmem:[%s4091_s5 + $0x258] sm:$0xff]  ;;  %v1320_v9 = vadd.f32 %v1064_v0, %v552_v63 }
 0x114   : > { %v2263_v5 = vsel %vm2262_vm0, %v2261_v62, %v2256_v2  ;;  %1785 = vadd.xlane.f32.xlu0 %v1300_v59  ;;  %v1718_v6 = vpop.xlane.xlu1 %1717  ;;  %v1256_v59 = vadd.f32 %v1000_v51, %v488_v50  ;;  %v985_v50 = vld [vmem:[%s4091_s5 + $0x278] sm:$0xff] }
 0x115   : > { %v1626_v10 = vpop.xlane.xlu0 %1625  ;;  %v2602_v28 = vrot.slane %v1718_v6, %v4393_v37  ;;  %v2285_v6 = vadd.s32 4294967256, %v4374_v14  ;;  %v1049_v63 = vld [vmem:[%s4091_s5 + $0x678] sm:$0xff] }
 0x116   : > { %v2374_v15 = vrot.slane %v1626_v10, %v4418_v3 }
 0x117   : > { %1693 = vadd.xlane.f32.xlu1 %v1254_v4  ;;  %v535_v4 = vld [vmem:[%s4091_s5 + $0x650] sm:$0xff] }
 0x118   : > { %v2375_v17 = vsel %vm2269_vm1, %v2374_v15, %v2370_v57  ;;  %1659 = vadd.xlane.f32.xlu0 %v1237_v7  ;;  %v1754_v18 = vpop.xlane.xlu1 %1753  ;;  %v1001_v15 = vld [vmem:[%s4091_s5 + $0x378] sm:$0xff] }
 0x119   : > { %v2690_v22 = vrot.slane %v1754_v18, %v4418_v3  ;;  %v1720_v23 = vpop.xlane.xlu0 %1719  ;;  %v4473_v18 = vsub.s32 %v2285_v6, %v4383_v24 }
 0x11a   : > { %v2606_v29 = vrot.slane %v1720_v23, %v4396_v39  ;;  %v1257_v23 = vadd.f32 %v1001_v15, %v489_v13 }
 0x11b   : > { %v2691_v30 = vsel %vm2269_vm1, %v2690_v22, %v2686_v55  ;;  %1821 = vadd.xlane.f32.xlu1 %v1318_v16  ;;  %v471_v55 = vld [vmem:[%s4091_s5 + $0x250] sm:$0xff] }
 0x11c   : > { %v2607_v32 = vsel %vm2262_vm0, %v2606_v29, %v2602_v28  ;;  %1787 = vadd.xlane.f32.xlu0 %v1301_v19  ;;  %v1628_v33 = vpop.xlane.xlu1 %1627  ;;  %v1239_v62 = vadd.f32 %v983_v56, %v471_v55  ;;  %v472_v19 = vld [vmem:[%s4091_s5 + $0x260] sm:$0xff]  ;;  %v553_v29 = vld [vmem:[%s4091_s5 + $0x770] sm:$0xff] }
 0x11d   : > { %v2379_v38 = vrot.slane %v1628_v33, %v4432_v25  ;;  %v1594_v40 = vpop.xlane.xlu0 %1593  ;;  %v1240_v28 = vadd.f32 %v984_v20, %v472_v19  ;;  %v536_v33 = vld [vmem:[%s4091_s5 + $0x660] sm:$0xff]  ;;  %v555_v19 = vld [vmem:[%s4091_s5 + $0x790] sm:$0xff]  ;;  %v1067_v20 = vld [vmem:[%s4091_s5 + $0x798] sm:$0xff] }
 0x11e   : > { %v2268_v44 = vrot.slane %v1594_v40, %v4418_v3 }
 0x11f   : > { %v2380_v45 = vsel %vm2276_vm2, %v2379_v38, %v2375_v17  ;;  %1695 = vadd.xlane.f32.xlu1 %v1255_v31 }
 0x120   : > { %v2270_v47 = vsel %vm2269_vm1, %v2268_v44, %v2263_v5  ;;  %1661 = vadd.xlane.f32.xlu0 %v1238_v34  ;;  %v1756_v48 = vpop.xlane.xlu1 %1755  ;;  %v1047_v5 = vld [vmem:[%s4091_s5 + $0x658] sm:$0xff]  ;;  %v1048_v34 = vld [vmem:[%s4091_s5 + $0x668] sm:$0xff]  ;;  %v490_v44 = vld [vmem:[%s4091_s5 + $0x380] sm:$0xff] }
 0x121   : > { %v2695_v52 = vrot.slane %v1756_v48, %v4432_v25  ;;  %v1722_v53 = vpop.xlane.xlu0 %1721  ;;  %v1303_v12 = vadd.f32 %v1047_v5, %v535_v4  ;;  %v1304_v43 = vadd.f32 %v1048_v34, %v536_v33  ;;  %v4493_v48 = vsub.s32 %v2292_v35, %v4383_v24  ;;  %v987_v33 = vld [vmem:[%s4091_s5 + $0x298] sm:$0xff] }
 0x122   : > { %v2611_v57 = vrot.slane %v1722_v53, %v4418_v3 }
 0x123   : > { %v2696_v58 = vsel %vm2276_vm2, %v2695_v52, %v2691_v30  ;;  %1823 = vadd.xlane.f32.xlu1 %v1319_v46  ;;  %v1065_v30 = vld [vmem:[%s4091_s5 + $0x778] sm:$0xff] }
 0x124   : > { %v2612_v60 = vsel %vm2269_vm1, %v2611_v57, %v2607_v32  ;;  %1789 = vadd.xlane.f32.xlu0 %v1302_v49  ;;  %v1630_v61 = vpop.xlane.xlu1 %1629  ;;  %v1321_v40 = vadd.f32 %v1065_v30, %v553_v29  ;;  %v473_v49 = vld [vmem:[%s4091_s5 + $0x270] sm:$0xff]  ;;  %v492_v29 = vld [vmem:[%s4091_s5 + $0x3a0] sm:$0xff]  ;;  %v1004_v30 = vld [vmem:[%s4091_s5 + $0x3a8] sm:$0xff] }
 0x125   : > { %v2384_v1 = vrot.slane %v1630_v61, %v4453_v54  ;;  %v1596_v2 = vpop.xlane.xlu0 %1595  ;;  %v1241_v57 = vadd.f32 %v985_v50, %v473_v49  ;;  %v1260_v34 = vadd.f32 %v1004_v30, %v492_v29  ;;  %v1070_v29 = vld [vmem:[%s4091_s5 + $0x7c8] sm:$0xff] }
 0x126   : > { %v2275_v7 = vrot.slane %v1596_v2, %v4432_v25 }
 0x127   : > { %v2385_v8 = vsel %vm2283_vm3, %v2384_v1, %v2380_v45  ;;  %1697 = vadd.xlane.f32.xlu1 %v1256_v59  ;;  %v1002_v45 = vld [vmem:[%s4091_s5 + $0x388] sm:$0xff] }
 0x128   : > { %v2277_v10 = vsel %vm2276_vm2, %v2275_v7, %v2270_v47  ;;  %1663 = vadd.xlane.f32.xlu0 %v1239_v62  ;;  %v1758_v11 = vpop.xlane.xlu1 %1757  ;;  %v1258_v53 = vadd.f32 %v1002_v45, %v490_v44  ;;  %v1066_v59 = vld [vmem:[%s4091_s5 + $0x788] sm:$0xff]  ;;  %v537_v62 = vld [vmem:[%s4091_s5 + $0x670] sm:$0xff] }
 0x129   : > { %v2700_v16 = vrot.slane %v1758_v11, %v4453_v54  ;;  %v1724_v17 = vpop.xlane.xlu0 %1723  ;;  %v1305_v6 = vadd.f32 %v1049_v63, %v537_v62  ;;  %v491_v7 = vld [vmem:[%s4091_s5 + $0x390] sm:$0xff]  ;;  %v986_v11 = vld [vmem:[%s4091_s5 + $0x288] sm:$0xff] }
 0x12a   : > { %v2616_v21 = vrot.slane %v1724_v17, %v4432_v25  ;;  %v1974_v45 = vld [vmem:[%s4098_s28 + $0x408] sm:$0xff] }
 0x12b   : > { %v2701_v22 = vsel %vm2283_vm3, %v2700_v16, %v2696_v58  ;;  %1825 = vadd.xlane.f32.xlu1 %v1320_v9  ;;  %v554_v58 = vld [vmem:[%s4091_s5 + $0x780] sm:$0xff] }
 0x12c   : > { %v2617_v26 = vsel %vm2276_vm2, %v2616_v21, %v2612_v60  ;;  %1791 = vadd.xlane.f32.xlu0 %v1303_v12  ;;  %v1632_v27 = vpop.xlane.xlu1 %1631  ;;  %v1322_v2 = vadd.f32 %v1066_v59, %v554_v58  ;;  %v476_v58 = vld [vmem:[%s4091_s5 + $0x2a0] sm:$0xff]  ;;  %v988_v59 = vld [vmem:[%s4091_s5 + $0x2a8] sm:$0xff] }
 0x12d   : > { %v2389_v31 = vrot.slane %v1632_v27, %v4473_v18  ;;  %v1598_v32 = vpop.xlane.xlu0 %1597  ;;  %v1244_v63 = vadd.f32 %v988_v59, %v476_v58  ;;  %v1054_v58 = vld [vmem:[%s4091_s5 + $0x6c8] sm:$0xff] }
 0x12e   : > { %v2282_v36 = vrot.slane %v1598_v32, %v4453_v54  ;;  %v475_v32 = vld [vmem:[%s4091_s5 + $0x290] sm:$0xff] }
 0x12f   : > { %v2390_v38 = vsel %vm2290_vm4, %v2389_v31, %v2385_v8  ;;  %1699 = vadd.xlane.f32.xlu1 %v1257_v23  ;;  %v1003_v8 = vld [vmem:[%s4091_s5 + $0x398] sm:$0xff]  ;;  %v1050_v23 = vld [vmem:[%s4091_s5 + $0x688] sm:$0xff] }
 0x130   : > { %v2284_v41 = vsel %vm2283_vm3, %v2282_v36, %v2277_v10  ;;  %1665 = vadd.xlane.f32.xlu0 %v1240_v28  ;;  %v1760_v42 = vpop.xlane.xlu1 %1759  ;;  %v474_v10 = vld [vmem:[%s4091_s5 + $0x280] sm:$0xff]  ;;  %v1259_v13 = vadd.f32 %v1003_v8, %v491_v7  ;;  %v1243_v36 = vadd.f32 %v987_v33, %v475_v32  ;;  %v1052_v8 = vld [vmem:[%s4091_s5 + $0x6a8] sm:$0xff]  ;;  %v541_v32 = vld [vmem:[%s4091_s5 + $0x6b0] sm:$0xff] }
 0x131   : > { %v2705_v46 = vrot.slane %v1760_v42, %v4473_v18  ;;  %v1726_v47 = vpop.xlane.xlu0 %1725  ;;  %v1242_v17 = vadd.f32 %v986_v11, %v474_v10  ;;  %v539_v42 = vld [vmem:[%s4091_s5 + $0x690] sm:$0xff]  ;;  %v540_v7 = vld [vmem:[%s4091_s5 + $0x6a0] sm:$0xff]  ;;  %v1053_v33 = vld [vmem:[%s4091_s5 + $0x6b8] sm:$0xff] }
 0x132   : > { %v2621_v51 = vrot.slane %v1726_v47, %v4453_v54  ;;  %v1976_v47 = vld [vmem:[%s4098_s28 + $0x418] sm:$0xff]  ;;  %v1308_v11 = vadd.f32 %v1052_v8, %v540_v7  ;;  %v479_v7 = vld [vmem:[%s4091_s5 + $0x2d0] sm:$0xff] }
 0x133   : > { %v4499_v52 = vsel %vm2290_vm4, %v2705_v46, %v2701_v22  ;;  %1827 = vadd.xlane.f32.xlu1 %v1321_v40  ;;  %v538_v22 = vld [vmem:[%s4091_s5 + $0x680] sm:$0xff]  ;;  %v1068_v40 = vld [vmem:[%s4091_s5 + $0x7a8] sm:$0xff]  ;;  %v991_v8 = vld [vmem:[%s4091_s5 + $0x2d8] sm:$0xff] }
 0x134   : > { %v2622_v55 = vsel %vm2283_vm3, %v2621_v51, %v2617_v26  ;;  %1793 = vadd.xlane.f32.xlu0 %v1304_v43  ;;  %v1634_v56 = vpop.xlane.xlu1 %1633  ;;  %v1323_v26 = vadd.f32 %v1067_v20, %v555_v19  ;;  %v1306_v28 = vadd.f32 %v1050_v23, %v538_v22  ;;  %v1051_v43 = vld [vmem:[%s4091_s5 + $0x698] sm:$0xff]  ;;  %v1978_v46 = vld [vmem:[%s4098_s28 + $0x428] sm:$0xff]  ;;  %v493_v51 = vld [vmem:[%s4091_s5 + $0x3b0] sm:$0xff] }
 0x135   : > { %v2394_v60 = vrot.slane %v1634_v56, %v4493_v48  ;;  %v1600_v61 = vpop.xlane.xlu0 %1599  ;;  %v1307_v50 = vadd.f32 %v1051_v43, %v539_v42  ;;  %v1980_v56 = vld [vmem:[%s4098_s28 + $0x438] sm:$0xff]  ;;  %v477_v19 = vld [vmem:[%s4091_s5 + $0x2b0] sm:$0xff] }
 0x136   : > { %v2289_v0 = vrot.slane %v1600_v61, %v4473_v18  ;;  %v989_v20 = vld [vmem:[%s4091_s5 + $0x2b8] sm:$0xff] }
 0x137   : > { %v4509_v1 = vsel %vm2297_vm5, %v2394_v60, %v2390_v38  ;;  %1701 = vadd.xlane.f32.xlu1 %v1258_v53  ;;  %v556_v38 = vld [vmem:[%s4091_s5 + $0x7a0] sm:$0xff]  ;;  %v1005_v53 = vld [vmem:[%s4091_s5 + $0x3b8] sm:$0xff]  ;;  %v3591_v60 = vpack.c.bf16 %v1980_v56, %v1976_v47 }
 0x138   : > { %v4512_v4 = vsel %vm2290_vm4, %v2289_v0, %v2284_v41  ;;  %1667 = vadd.xlane.f32.xlu0 %v1241_v57  ;;  %v4514_v5 = vpop.xlane.xlu1 %1761  ;;  %v1324_v44 = vadd.f32 %v1068_v40, %v556_v38  ;;  %v1261_v61 = vadd.f32 %v1005_v53, %v493_v51  ;;  %v557_v0 = vld [vmem:[%s4091_s5 + $0x7b0] sm:$0xff]  ;;  %v1309_v38 = vadd.f32 %v1053_v33, %v541_v32  ;;  %v1007_v42 = vld [vmem:[%s4091_s5 + $0x3d8] sm:$0xff]  ;;  %v542_v56 = vld [vmem:[%s4091_s5 + $0x6c0] sm:$0xff] }
 0x139   : > { %v1728_v9 = vpop.xlane.xlu0 %1727  ;;  %3592 = vmatprep.subr.bf16.mxu1 %v3591_v60  ;;  %v495_v40 = vld [vmem:[%s4091_s5 + $0x3d0] sm:$0xff]  ;;  %v1071_v53 = vld [vmem:[%s4091_s5 + $0x7d8] sm:$0xff] }
 0x13a   : > { %v2626_v12 = vrot.slane %v1728_v9, %v4473_v18  ;;  %v559_v51 = vld [vmem:[%s4091_s5 + $0x7d0] sm:$0xff] }
 0x13b   : > { %1829 = vadd.xlane.f32.xlu1 %v1322_v2  ;;  %v1069_v2 = vld [vmem:[%s4091_s5 + $0x7b8] sm:$0xff]  ;;  %v1327_v59 = vadd.f32 %v1071_v53, %v559_v51  ;;  %v497_v33 = vld [vmem:[%s4091_s5 + $0x3f0] sm:$0xff]  ;;  %v2320_v51 = vadd.s32 4294967216, %v4374_v14 }
 0x13c   : > { %v4522_v15 = vsel %vm2290_vm4, %v2626_v12, %v2622_v55  ;;  %1795 = vadd.xlane.f32.xlu0 %v1305_v6  ;;  %v4524_v16 = vpop.xlane.xlu1 %1635  ;;  %v3463_v55 = vpack.c.bf16 %v1978_v46, %v1974_v45  ;;  %v1325_v9 = vadd.f32 %v1069_v2, %v557_v0  ;;  %v494_v12 = vld [vmem:[%s4091_s5 + $0x3c0] sm:$0xff]  ;;  %v990_v45 = vld [vmem:[%s4091_s5 + $0x2c8] sm:$0xff]  ;;  %v1263_v46 = vadd.f32 %v1007_v42, %v495_v40 }
 0x13d   : > { %v4528_v21 = vpop.xlane.xlu0 %1601  ;;  %v1008_v0 = vld [vmem:[%s4091_s5 + $0x3e8] sm:$0xff]  ;;  %v480_v42 = vld [vmem:[%s4091_s5 + $0x2e0] sm:$0xff] }
 0x13e   : > { %3464 = vmatprep.subr.bf16.mxu0 %v3463_v55 }
 0x13f   : > { %1703 = vadd.xlane.f32.xlu1 %v1259_v13  ;;  %v1006_v13 = vld [vmem:[%s4091_s5 + $0x3c8] sm:$0xff] }
 0x140   : > { %1669 = vadd.xlane.f32.xlu0 %v1242_v17  ;;  %v4532_v27 = vpop.xlane.xlu1 %1763  ;;  %v1262_v22 = vadd.f32 %v1006_v13, %v494_v12  ;;  %v1247_v12 = vadd.f32 %v991_v8, %v479_v7  ;;  %v560_v13 = vld [vmem:[%s4091_s5 + $0x7e0] sm:$0xff]  ;;  %v1056_v8 = vld [vmem:[%s4091_s5 + $0x6e8] sm:$0xff] }
 0x141   : > { %v4536_v31 = vpop.xlane.xlu0 %1729  ;;  %v544_v7 = vld [vmem:[%s4091_s5 + $0x6e0] sm:$0xff] }
 0x143   : > { %1831 = vadd.xlane.f32.xlu1 %v1323_v26  ;;  %v1245_v26 = vadd.f32 %v989_v20, %v477_v19  ;;  %v1072_v19 = vld [vmem:[%s4091_s5 + $0x7e8] sm:$0xff] }
 0x144   : > { %1797 = vadd.xlane.f32.xlu0 %v1306_v28  ;;  %v4540_v35 = vpop.xlane.xlu1 %1637  ;;  %v558_v28 = vld [vmem:[%s4091_s5 + $0x7c0] sm:$0xff] }
 0x145   : > { %v4544_v41 = vpop.xlane.xlu0 %1603 }
 0x147   : > { %1705 = vadd.xlane.f32.xlu1 %v1260_v34  ;;  %v1326_v34 = vadd.f32 %v1070_v29, %v558_v28  ;;  %v1328_v28 = vadd.f32 %v1072_v19, %v560_v13  ;;  %v2341_v19 = vadd.s32 4294967192, %v4374_v14 }
 0x148   : > { %1671 = vadd.xlane.f32.xlu0 %v1243_v36  ;;  %v4551_v49 = vpop.xlane.xlu1 %1765 }
 0x149   : > { %v4556_v57 = vpop.xlane.xlu0 %1731 }
 0x14b   : > { %1833 = vadd.xlane.f32.xlu1 %v1324_v44  ;;  %v478_v44 = vld [vmem:[%s4091_s5 + $0x2c0] sm:$0xff] }
 0x14c   : > { %1799 = vadd.xlane.f32.xlu0 %v1307_v50  ;;  %v4560_v62 = vpop.xlane.xlu1 %1639  ;;  %v1246_v50 = vadd.f32 %v990_v45, %v478_v44  ;;  %v992_v44 = vld [vmem:[%s4091_s5 + $0x2e8] sm:$0xff]  ;;  %v2306_v45 = vadd.s32 4294967232, %v4374_v14 }
 0x14d   : > { %v4564_v6 = vpop.xlane.xlu0 %1605 }
 0x14f   : > { %1707 = vadd.xlane.f32.xlu1 %v1261_v61  ;;  %v1310_v61 = vadd.f32 %v1054_v58, %v542_v56  ;;  %v1248_v56 = vadd.f32 %v992_v44, %v480_v42  ;;  %v561_v58 = vld [vmem:[%s4091_s5 + $0x7f0] sm:$0xff]  ;;  %v2355_v42 = vadd.s32 4294967176, %v4374_v14  ;;  %v2710_v44 = vrot.slane %v4514_v5, %v4493_v48 }
 0x150   : > { %1673 = vadd.xlane.f32.xlu0 %v1244_v63  ;;  %v4568_v10 = vpop.xlane.xlu1 %1767  ;;  %v496_v63 = vld [vmem:[%s4091_s5 + $0x3e0] sm:$0xff] }
 0x151   : > { %v4572_v17 = vpop.xlane.xlu0 %1733 }
 0x153   : > { %1835 = vadd.xlane.f32.xlu1 %v1325_v9  ;;  %v1264_v9 = vadd.f32 %v1008_v0, %v496_v63  ;;  %v2327_v63 = vadd.s32 4294967208, %v4374_v14 }
 0x154   : > { %1801 = vadd.xlane.f32.xlu0 %v1308_v11  ;;  %v4576_v23 = vpop.xlane.xlu1 %1641 }
 0x155   : > { %v4580_v30 = vpop.xlane.xlu0 %1607 }
 0x157   : > { %1709 = vadd.xlane.f32.xlu1 %v1262_v22  ;;  %v543_v22 = vld [vmem:[%s4091_s5 + $0x6d0] sm:$0xff] }
 0x158   : > { %1675 = vadd.xlane.f32.xlu0 %v1245_v26  ;;  %v4584_v36 = vpop.xlane.xlu1 %1769  ;;  %v1055_v26 = vld [vmem:[%s4091_s5 + $0x6d8] sm:$0xff] }
 0x159   : > { %v4588_v43 = vpop.xlane.xlu0 %1735  ;;  %v1311_v32 = vadd.f32 %v1055_v26, %v543_v22  ;;  %v2348_v26 = vadd.s32 4294967184, %v4374_v14 }
 0x15b   : > { %1837 = vadd.xlane.f32.xlu1 %v1326_v34  ;;  %v1009_v34 = vld [vmem:[%s4091_s5 + $0x3f8] sm:$0xff] }
 0x15c   : > { %1803 = vadd.xlane.f32.xlu0 %v1309_v38  ;;  %v4592_v47 = vpop.xlane.xlu1 %1643  ;;  %v2299_v38 = vadd.s32 4294967240, %v4374_v14 }
 0x15d   : > { %v4596_v55 = vpop.xlane.xlu0 %1609 }
 0x15f   : > { %1711 = vadd.xlane.f32.xlu1 %v1263_v46  ;;  %v2313_v46 = vadd.s32 4294967224, %v4374_v14 }
 0x160   : > { %1677 = vadd.xlane.f32.xlu0 %v1246_v50  ;;  %v4600_v60 = vpop.xlane.xlu1 %1771  ;;  %v1265_v50 = vadd.f32 %v1009_v34, %v497_v33  ;;  %v1312_v33 = vadd.f32 %v1056_v8, %v544_v7  ;;  %v545_v34 = vld [vmem:[%s4091_s5 + $0x6f0] sm:$0xff] }
 0x161   : > { %v4604_v2 = vpop.xlane.xlu0 %1737  ;;  %v4645_v13 = vsub.s32 %v2313_v46, %v4383_v24  ;;  %v4662_v46 = vsub.s32 %v2327_v63, %v4383_v24  ;;  %v4681_v63 = vsub.s32 %v2348_v26, %v4383_v24 }
 0x163   : > { %1839 = vadd.xlane.f32.xlu1 %v1327_v59  ;;  %v1073_v59 = vld [vmem:[%s4091_s5 + $0x7f8] sm:$0xff] }
 0x164   : > { %1805 = vadd.xlane.f32.xlu0 %v1310_v61  ;;  %v4608_v11 = vpop.xlane.xlu1 %1645  ;;  %v4633_v61 = vsub.s32 %v2299_v38, %v4383_v24  ;;  %v1329_v22 = vadd.f32 %v1073_v59, %v561_v58  ;;  %v1057_v38 = vld [vmem:[%s4091_s5 + $0x6f8] sm:$0xff]  ;;  %v2296_v58 = vrot.slane %v4528_v21, %v4493_v48  ;;  %v4678_v59 = vsub.s32 %v2341_v19, %v4383_v24 }
 0x165   : > { %v4612_v20 = vpop.xlane.xlu0 %1611  ;;  %v1313_v7 = vadd.f32 %v1057_v38, %v545_v34  ;;  %v2711_v19 = vsel %vm2297_vm5, %v2710_v44, %v4499_v52  ;;  %v2409_v52 = vrot.slane %v4560_v62, %v4645_v13 }
 0x167   : > { %1713 = vadd.xlane.f32.xlu1 %v1264_v9  ;;  %v4641_v9 = vsub.s32 %v2306_v45, %v4383_v24  ;;  %v2399_v45 = vrot.slane %v4524_v16, %v4633_v61  ;;  %v2631_v16 = vrot.slane %v4536_v31, %v4493_v48  ;;  %v4690_v31 = vsub.s32 %v2355_v42, %v4383_v24 }
 0x168   : > { %1679 = vadd.xlane.f32.xlu0 %v1247_v12  ;;  %v4616_v29 = vpop.xlane.xlu1 %1773  ;;  %v2334_v12 = vadd.s32 4294967200, %v4374_v14  ;;  %v2715_v14 = vrot.slane %v4532_v27, %v4633_v61  ;;  %v2303_v27 = vrot.slane %v4544_v41, %v4633_v61 }
 0x169   : > { %v4621_v40 = vpop.xlane.xlu0 %1739  ;;  %v2404_v21 = vrot.slane %v4540_v35, %v4641_v9  ;;  %v2720_v26 = vrot.slane %v4551_v49, %v4641_v9  ;;  %v2636_v35 = vrot.slane %v4556_v57, %v4633_v61  ;;  %v2632_v49 = vsel %vm2297_vm5, %v2631_v16, %v4522_v15 }
 0x16a   : > { %v4673_v5 = vsub.s32 %v2334_v12, %v4383_v24  ;;  %v2716_v34 = vsel %vm2304_vm6, %v2715_v14, %v2711_v19  ;;  %v2725_v57 = vrot.slane %v4568_v10, %v4645_v13  ;;  %v2641_v38 = vrot.slane %v4572_v17, %v4641_v9 }
 0x16b   : > { %1841 = vadd.xlane.f32.xlu1 %v1328_v28  ;;  %v4650_v28 = vsub.s32 %v2320_v51, %v4383_v24  ;;  %v481_v51 = vld [vmem:[%s4091_s5 + $0x2f0] sm:$0xff]  ;;  %v2721_v17 = vsel %vm2311_vm7, %v2720_v26, %v2716_v34  ;;  %v2637_v44 = vsel %vm2304_vm6, %v2636_v35, %v2632_v49 }
 0x16c   : > { %1807 = vadd.xlane.f32.xlu0 %v1311_v32  ;;  %v4628_v53 = vpop.xlane.xlu1 %1647  ;;  %v2726_v14 = vsel %vm2318_vm8, %v2725_v57, %v2721_v17  ;;  %v2642_v16 = vsel %vm2311_vm7, %v2641_v38, %v2637_v44 }
 0x16d   : > { %v4636_v0 = vpop.xlane.xlu0 %1613  ;;  %v2730_v15 = vrot.slane %v4584_v36, %v4650_v28  ;;  %v2324_v36 = vrot.slane %v4596_v55, %v4650_v28  ;;  %v2740_v55 = vrot.slane %v4616_v29, %v4673_v5 }
 0x16e   : > { %v2338_v57 = vrot.slane %v4636_v0, %v4673_v5 }
 0x16f   : > { %1715 = vadd.xlane.f32.xlu1 %v1265_v50 }
 0x170   : > { %1681 = vadd.xlane.f32.xlu0 %v1248_v56  ;;  %v4652_v32 = vpop.xlane.xlu1 %1775  ;;  %v993_v56 = vld [vmem:[%s4091_s5 + $0x2f8] sm:$0xff] }
 0x171   : > { %v4664_v50 = vpop.xlane.xlu0 %1741  ;;  %v1249_v12 = vadd.f32 %v993_v56, %v481_v51 }
 0x173   : > { %1843 = vadd.xlane.f32.xlu1 %v1329_v22  ;;  %v2400_v22 = vsel %vm2304_vm6, %v2399_v45, %v4509_v1  ;;  %v2310_v1 = vrot.slane %v4564_v6, %v4641_v9  ;;  %v2317_v6 = vrot.slane %v4580_v30, %v4645_v13  ;;  %v2419_v45 = vrot.slane %v4592_v47, %v4662_v46 }
 0x174   : > { %1809 = vadd.xlane.f32.xlu0 %v1312_v33  ;;  %v4687_v8 = vpop.xlane.xlu1 %1649  ;;  %v2298_v33 = vsel %vm2297_vm5, %v2296_v58, %v4512_v4  ;;  %v2414_v4 = vrot.slane %v4576_v23, %v4650_v28  ;;  %v2405_v62 = vsel %vm2311_vm7, %v2404_v21, %v2400_v22  ;;  %v2646_v23 = vrot.slane %v4588_v43, %v4645_v13 }
 0x175   : > { %v4700_v41 = vpop.xlane.xlu0 %1615  ;;  %v2305_v42 = vsel %vm2304_vm6, %v2303_v27, %v2298_v33  ;;  %v2410_v30 = vsel %vm2318_vm8, %v2409_v52, %v2405_v62  ;;  %v2735_v58 = vrot.slane %v4600_v60, %v4662_v46  ;;  %v2651_v47 = vrot.slane %v4604_v2, %v4650_v28 }
 0x176   : > { %v2312_v56 = vsel %vm2311_vm7, %v2310_v1, %v2305_v42  ;;  %v2415_v43 = vsel %vm2325_vm9, %v2414_v4, %v2410_v30  ;;  %v2731_v21 = vsel %vm2325_vm9, %v2730_v15, %v2726_v14  ;;  %v2424_v27 = vrot.slane %v4608_v11, %v4673_v5  ;;  %v1979_v14 = vld [vmem:[%s4098_s28 + $0x430] sm:$0xff] }
 0x177   : > { %1811 = vadd.xlane.f32.xlu1 %v1313_v7  ;;  %v2319_v7 = vsel %vm2318_vm8, %v2317_v6, %v2312_v56  ;;  %v2420_v19 = vsel %vm2332_vm10, %v2419_v45, %v2415_v43  ;;  %v2429_v22 = vrot.slane %v4628_v53, %v4678_v59  ;;  %v2745_v2 = vrot.slane %v4652_v32, %v4678_v59  ;;  %v1973_v45 = vld [vmem:[%s4098_s28 + $0x400] sm:$0xff] }
 0x178   : > { %1683 = vadd.xlane.f32.xlu0 %v1249_v12  ;;  %v1778_v10 = vpop.xlane.xlu1 %1777  ;;  %v2647_v12 = vsel %vm2318_vm8, %v2646_v23, %v2642_v16  ;;  %v2326_v35 = vsel %vm2325_vm9, %v2324_v36, %v2319_v7  ;;  %v2736_v33 = vsel %vm2332_vm10, %v2735_v58, %v2731_v21  ;;  %v2434_v11 = vrot.slane %v4687_v8, %v4681_v63  ;;  %v1975_v58 = vld [vmem:[%s4098_s28 + $0x410] sm:$0xff]  ;;  %v1982_v16 = vld [vmem:[%s4098_s28 + $0x448] sm:$0xff] }
 0x179   : > { %v1744_v51 = vpop.xlane.xlu0 %1743  ;;  %v2750_v29 = vrot.slane %v1778_v10, %v4681_v63  ;;  %v2652_v34 = vsel %vm2325_vm9, %v2651_v47, %v2647_v12  ;;  %v2331_v52 = vrot.slane %v4612_v20, %v4662_v46  ;;  %v2656_v53 = vrot.slane %v4621_v40, %v4662_v46 }
 0x17a   : > { %v2425_v1 = vsel %vm2339_vm11, %v2424_v27, %v2420_v19  ;;  %v2741_v49 = vsel %vm2339_vm11, %v2740_v55, %v2736_v33  ;;  %v2661_v8 = vrot.slane %v4664_v50, %v4673_v5  ;;  %v2666_v40 = vrot.slane %v1744_v51, %v4678_v59  ;;  %v1977_v51 = vld [vmem:[%s4098_s28 + $0x420] sm:$0xff]  ;;  %v1986_v27 = vld [vmem:[%s4098_s28 + $0x468] sm:$0xff]  ;;  %v1984_v55 = vld [vmem:[%s4098_s28 + $0x458] sm:$0xff] }
 0x17b   : > { %v2430_v20 = vsel %vm2346_vm12, %v2429_v22, %v2425_v1  ;;  %v2746_v4 = vsel %vm2346_vm12, %v2745_v2, %v2741_v49  ;;  %v2345_v0 = vrot.slane %v4700_v41, %v4678_v59  ;;  %v2657_v10 = vsel %vm2332_vm10, %v2656_v53, %v2652_v34  ;;  %v1983_v1 = vld [vmem:[%s4098_s28 + $0x450] sm:$0xff] }
 0x17c   : > { %v1652_v60 = vpop.xlane.xlu1 %1651  ;;  %v2435_v50 = vsel %vm2353_vm13, %v2434_v11, %v2430_v20  ;;  %v2751_v15 = vsel %vm2353_vm13, %v2750_v29, %v2746_v4  ;;  %v2333_v41 = vsel %vm2332_vm10, %v2331_v52, %v2326_v35  ;;  %v2662_v30 = vsel %vm2339_vm11, %v2661_v8, %v2657_v10  ;;  %v1981_v11 = vld [vmem:[%s4098_s28 + $0x440] sm:$0xff]  ;;  %v1987_v49 = vld [vmem:[%s4098_s28 + $0x470] sm:$0xff]  ;;  %v1994_v4 = vld [vmem:[%s4098_s28 + $0x4a8] sm:$0xff] }
 0x17d   : > { %v1618_v26 = vpop.xlane.xlu0 %1617  ;;  %v2439_v32 = vrot.slane %v1652_v60, %v4690_v31  ;;  %v2340_v43 = vsel %vm2339_vm11, %v2338_v57, %v2333_v41  ;;  %v2667_v47 = vsel %vm2346_vm12, %v2666_v40, %v2662_v30  ;;  %v1988_v60 = vld [vmem:[%s4098_s28 + $0x478] sm:$0xff]  ;;  %v3465_v35 = vpack.c.bf16 %v1977_v51, %v1973_v45  ;;  %v1985_v29 = vld [vmem:[%s4098_s28 + $0x460] sm:$0xff]  ;;  %v1990_v57 = vld [vmem:[%s4098_s28 + $0x488] sm:$0xff] }
 0x17e   : > { %v2352_v17 = vrot.slane %v1618_v26, %v4681_v63  ;;  %v2347_v12 = vsel %vm2346_vm12, %v2345_v0, %v2340_v43  ;;  %v3593_v33 = vpack.c.bf16 %v1979_v14, %v1975_v58  ;;  %v3467_v53 = vpack.c.bf16 %v1986_v27, %v1982_v16  ;;  %v1992_v40 = vld [vmem:[%s4098_s28 + $0x498] sm:$0xff]  ;;  %v1991_v45 = vld [vmem:[%s4098_s28 + $0x490] sm:$0xff]  ;;  %v1998_v41 = vld [vmem:[%s4098_s28 + $0x4c8] sm:$0xff] }
 0x17f   : > { %v2440_v44 = vsel %vm2360_vm14, %v2439_v32, %v2435_v50  ;;  %v3595_v32 = vpack.c.bf16 %v1988_v60, %v1984_v55  ;;  %v3469_v0 = vpack.c.bf16 %v1985_v29, %v1981_v11  ;;  %v1989_v50 = vld [vmem:[%s4098_s28 + $0x480] sm:$0xff]  ;;  %v1995_v51 = vld [vmem:[%s4098_s28 + $0x4b0] sm:$0xff]  ;;  %v2000_v58 = vld [vmem:[%s4098_s28 + $0x4d8] sm:$0xff] }
 0x180   : > { %v1780_v38 = vpop.xlane.xlu1 %1779  ;;  %v2354_v2 = vsel %vm2353_vm13, %v2352_v17, %v2347_v12  ;;  %v2004_v14 = vld [vmem:[%s4098_s28 + $0x4f8] sm:$0xff] }
 0x181   : > { %v2755_v62 = vrot.slane %v1780_v38, %v4690_v31  ;;  %v1746_v42 = vpop.xlane.xlu0 %1745  ;;  %v3603_v12 = vpack.c.bf16 %v2004_v14, %v2000_v58  ;;  %v2008_v11 = vld [vmem:[%s4098_s28 + $0x518] sm:$0xff]  ;;  %v2022_v58 = vld [vmem:[%s4098_s28 + $0x588] sm:$0xff] }
 0x182   : > { %v2671_v6 = vrot.slane %v1746_v42, %v4681_v63  ;;  %v2012_v29 = vld [vmem:[%s4098_s28 + $0x538] sm:$0xff] }
 0x183   : > { %v2756_v23 = vsel %vm2360_vm14, %v2755_v62, %v2751_v15  ;;  %v1996_v62 = vld [vmem:[%s4098_s28 + $0x4b8] sm:$0xff]  ;;  %v1993_v15 = vld [vmem:[%s4098_s28 + $0x4a0] sm:$0xff] }
 0x184   : > { %v1748_v56 = vpop.xlane.xlu1 %1747  ;;  %v2917_v36 = vsel %vm2915_vm15, %v2756_v23, %v2440_v44  ;;  %v2672_v19 = vsel %vm2353_vm13, %v2671_v6, %v2667_v47  ;;  %v3597_v6 = vpack.c.bf16 %v1987_v49, %v1983_v1  ;;  %v3471_v44 = vpack.c.bf16 %v1994_v4, %v1990_v57  ;;  %v2009_v1 = vld [vmem:[%s4098_s28 + $0x520] sm:$0xff]  ;;  %v2011_v4 = vld [vmem:[%s4098_s28 + $0x530] sm:$0xff] }
 0x185   : > { %v2676_v7 = vrot.slane %v1748_v56, %v4690_v31  ;;  %v1620_v21 = vpop.xlane.xlu0 %1619  ;;  %2988 = vmatprep.mubr.f32.mxu0 %v2917_v36  ;;  %3130 = vmatprep.mubr.f32.mxu1 %v2917_v36  ;;  %v3599_v23 = vpack.c.bf16 %v1996_v62, %v1992_v40  ;;  %v2002_v36 = vld [vmem:[%s4098_s28 + $0x4e8] sm:$0xff]  ;;  %v3473_v43 = vpack.c.bf16 %v1993_v15, %v1989_v50 }
 0x186   : > { %v2359_v22 = vrot.slane %v1620_v21, %v4690_v31  ;;  %v3601_v47 = vpack.c.bf16 %v1995_v51, %v1991_v45  ;;  %v2001_v21 = vld [vmem:[%s4098_s28 + $0x4e0] sm:$0xff]  ;;  %v3475_v60 = vpack.c.bf16 %v2002_v36, %v1998_v41  ;;  %v2014_v40 = vld [vmem:[%s4098_s28 + $0x548] sm:$0xff]  ;;  %v2019_v36 = vld [vmem:[%s4098_s28 + $0x570] sm:$0xff] }
 0x187   : > { %v2677_v26 = vsel %vm2360_vm14, %v2676_v7, %v2672_v19  ;;  %v1997_v7 = vld [vmem:[%s4098_s28 + $0x4c0] sm:$0xff]  ;;  %v1999_v19 = vld [vmem:[%s4098_s28 + $0x4d0] sm:$0xff] }
 0x188   : > { %v1688_v34 = vpop.xlane.xlu1 %1687  ;;  %v2361_v52 = vsel %vm2360_vm14, %v2359_v22, %v2354_v2  ;;  %v2003_v22 = vld [vmem:[%s4098_s28 + $0x4f0] sm:$0xff]  ;;  %v2006_v2 = vld [vmem:[%s4098_s28 + $0x508] sm:$0xff] }
 0x189   : > { %v2527_v8 = vrot.slane %v1688_v34, %v4396_v39  ;;  %v1686_v38 = vpop.xlane.xlu0 %1685  ;;  %v2916_v20 = vsel %vm2915_vm15, %v2677_v26, %v2361_v52  ;;  %v3477_v52 = vpack.c.bf16 %v2001_v21, %v1997_v7  ;;  %v2028_v7 = vld [vmem:[%s4098_s28 + $0x5b8] sm:$0xff] }
 0x18a   : > { %v2523_v42 = vrot.slane %v1686_v38, %v4393_v37  ;;  %2989 = vmatmul.mubr.f32.vlgmr.msra.gmra.mrb[0].mxu0 %v2916_v20  ;;  %3131 = vmatmul.mubr.f32.vlgmr.msra.gmra.mrb[0].mxu1 %v2916_v20  ;;  %v3607_v38 = vpack.c.bf16 %v2012_v29, %v2008_v11  ;;  %v2007_v20 = vld [vmem:[%s4098_s28 + $0x510] sm:$0xff] }
 0x18b   : > { %3466 = vmatpush1.bf16.msra.mxu0 %v3465_v35  ;;  %3594 = vmatpush1.bf16.msra.mxu1 %v3593_v33  ;;  %v2010_v33 = vld [vmem:[%s4098_s28 + $0x528] sm:$0xff] }
 0x18c   : > { %v4816_v10 = vsel %vm2262_vm0, %v2527_v8, %v2523_v42  ;;  %v1816_v17 = vpop.xlane.xlu1 %1815  ;;  %3468 = vmatprep.subr.bf16.mxu0 %v3467_v53  ;;  %3596 = vmatprep.subr.bf16.mxu1 %v3595_v32  ;;  %v3605_v53 = vpack.c.bf16 %v2003_v22, %v1999_v19  ;;  %v2005_v32 = vld [vmem:[%s4098_s28 + $0x500] sm:$0xff]  ;;  %v3479_v8 = vpack.c.bf16 %v2010_v33, %v2006_v2  ;;  %v2018_v42 = vld [vmem:[%s4098_s28 + $0x568] sm:$0xff] }
 0x18d   : > { %v2843_v30 = vrot.slane %v1816_v17, %v4396_v39  ;;  %v1814_v56 = vpop.xlane.xlu0 %1813  ;;  %v3481_v15 = vpack.c.bf16 %v2009_v1, %v2005_v32  ;;  %v3609_v17 = vpack.c.bf16 %v2011_v4, %v2007_v20  ;;  %v3483_v41 = vpack.c.bf16 %v2018_v42, %v2014_v40  ;;  %v2021_v19 = vld [vmem:[%s4098_s28 + $0x580] sm:$0xff]  ;;  %v2030_v33 = vld [vmem:[%s4098_s28 + $0x5c8] sm:$0xff] }
 0x18e   : > { %v2839_v16 = vrot.slane %v1814_v56, %v4393_v37  ;;  %v2015_v56 = vld [vmem:[%s4098_s28 + $0x550] sm:$0xff]  ;;  %v2025_v22 = vld [vmem:[%s4098_s28 + $0x5a0] sm:$0xff] }
 0x18f   : > { %3470 = vmatpush1.bf16.msra.mxu0 %v3469_v0  ;;  %3598 = vmatpush1.bf16.msra.mxu1 %v3597_v6  ;;  %v2016_v0 = vld [vmem:[%s4098_s28 + $0x558] sm:$0xff]  ;;  %v2033_v20 = vld [vmem:[%s4098_s28 + $0x5e0] sm:$0xff] }
 0x190   : > { %v2844_v27 = vsel %vm2262_vm0, %v2843_v30, %v2839_v16  ;;  %v1656_v55 = vpop.xlane.xlu1 %1655  ;;  %3472 = vmatprep.subr.bf16.mxu0 %v3471_v44  ;;  %3600 = vmatprep.subr.bf16.mxu1 %v3599_v23  ;;  %v2020_v6 = vld [vmem:[%s4098_s28 + $0x578] sm:$0xff]  ;;  %v2013_v44 = vld [vmem:[%s4098_s28 + $0x540] sm:$0xff] }
 0x191   : > { %v2448_v26 = vrot.slane %v1656_v55, %v4396_v39  ;;  %v1654_v35 = vpop.xlane.xlu0 %1653  ;;  %v2017_v23 = vld [vmem:[%s4098_s28 + $0x560] sm:$0xff]  ;;  %v3611_v30 = vpack.c.bf16 %v2020_v6, %v2016_v0  ;;  %v2031_v0 = vld [vmem:[%s4098_s28 + $0x5d0] sm:$0xff] }
 0x192   : > { %v2444_v34 = vrot.slane %v1654_v35, %v4393_v37  ;;  %v2023_v35 = vld [vmem:[%s4098_s28 + $0x590] sm:$0xff] }
 0x193   : > { %3474 = vmatpush1.bf16.msra.mxu0 %v3473_v43  ;;  %3602 = vmatpush1.bf16.msra.mxu1 %v3601_v47  ;;  %v2026_v43 = vld [vmem:[%s4098_s28 + $0x5a8] sm:$0xff]  ;;  %v2024_v47 = vld [vmem:[%s4098_s28 + $0x598] sm:$0xff]  ;;  %v2035_v6 = vld [vmem:[%s4098_s28 + $0x5f0] sm:$0xff] }
 0x194   : > { %v4840_v49 = vsel %vm2262_vm0, %v2448_v26, %v2444_v34  ;;  %v1782_v57 = vpop.xlane.xlu1 %1781  ;;  %3476 = vmatprep.subr.bf16.mxu0 %v3475_v60  ;;  %3604 = vmatprep.subr.bf16.mxu1 %v3603_v12  ;;  %v3485_v60 = vpack.c.bf16 %v2017_v23, %v2013_v44  ;;  %v3613_v12 = vpack.c.bf16 %v2019_v36, %v2015_v56  ;;  %v2034_v34 = vld [vmem:[%s4098_s28 + $0x5e8] sm:$0xff]  ;;  %v2040_v23 = vld [vmem:[%s4098_s28 + $0x618] sm:$0xff]  ;;  %v2037_v56 = vld [vmem:[%s4098_s28 + $0x600] sm:$0xff] }
 0x195   : > { %v1690_v62 = vpop.xlane.xlu0 %1689  ;;  %v2760_v21 = vrot.slane %v1782_v57, %v4393_v37  ;;  %v3487_v37 = vpack.c.bf16 %v2026_v43, %v2022_v58  ;;  %v3489_v57 = vpack.c.bf16 %v2025_v22, %v2021_v19  ;;  %v2042_v44 = vld [vmem:[%s4098_s28 + $0x628] sm:$0xff]  ;;  %v2041_v36 = vld [vmem:[%s4098_s28 + $0x620] sm:$0xff]  ;;  %v2039_v43 = vld [vmem:[%s4098_s28 + $0x610] sm:$0xff] }
 0x196   : > { %v2532_v50 = vrot.slane %v1690_v62, %v4418_v3  ;;  %v3491_v62 = vpack.c.bf16 %v2034_v34, %v2030_v33  ;;  %v2051_v34 = vld [vmem:[%s4098_s28 + $0x670] sm:$0xff] }
 0x197   : > { %3478 = vmatpush1.bf16.msra.mxu0 %v3477_v52  ;;  %3606 = vmatpush1.bf16.msra.mxu1 %v3605_v53  ;;  %v2032_v52 = vld [vmem:[%s4098_s28 + $0x5d8] sm:$0xff] }
 0x198   : > { %v2533_v45 = vsel %vm2269_vm1, %v2532_v50, %v4816_v10  ;;  %v1818_v51 = vpop.xlane.xlu1 %1817  ;;  %3480 = vmatprep.subr.bf16.mxu0 %v3479_v8  ;;  %3608 = vmatprep.subr.bf16.mxu1 %v3607_v38  ;;  %v2036_v53 = vld [vmem:[%s4098_s28 + $0x5f8] sm:$0xff]  ;;  %v2029_v38 = vld [vmem:[%s4098_s28 + $0x5c0] sm:$0xff]  ;;  %v2038_v50 = vld [vmem:[%s4098_s28 + $0x608] sm:$0xff] }
 0x199   : > { %v2848_v14 = vrot.slane %v1818_v51, %v4418_v3  ;;  %v1784_v16 = vpop.xlane.xlu0 %1783  ;;  %v3619_v42 = vpack.c.bf16 %v2036_v53, %v2032_v52  ;;  %v2054_v52 = vld [vmem:[%s4098_s28 + $0x688] sm:$0xff] }
 0x19a   : > { %v2764_v10 = vrot.slane %v1784_v16, %v4396_v39  ;;  %v3615_v39 = vpack.c.bf16 %v2028_v7, %v2024_v47  ;;  %v3495_v16 = vpack.c.bf16 %v2042_v44, %v2038_v50  ;;  %v2043_v47 = vld [vmem:[%s4098_s28 + $0x630] sm:$0xff]  ;;  %v2046_v7 = vld [vmem:[%s4098_s28 + $0x648] sm:$0xff] }
 0x19b   : > { %v2849_v55 = vsel %vm2269_vm1, %v2848_v14, %v2844_v27  ;;  %3482 = vmatpush1.bf16.msra.mxu0 %v3481_v15  ;;  %3610 = vmatpush1.bf16.msra.mxu1 %v3609_v17  ;;  %v2027_v27 = vld [vmem:[%s4098_s28 + $0x5b0] sm:$0xff]  ;;  %v2062_v44 = vld [vmem:[%s4098_s28 + $0x6c8] sm:$0xff] }
 0x19c   : > { %v2765_v2 = vsel %vm2262_vm0, %v2764_v10, %v2760_v21  ;;  %v1692_v26 = vpop.xlane.xlu1 %1691  ;;  %3484 = vmatprep.subr.bf16.mxu0 %v3483_v41  ;;  %3612 = vmatprep.subr.bf16.mxu1 %v3611_v30  ;;  %v3617_v8 = vpack.c.bf16 %v2027_v27, %v2023_v35  ;;  %v3493_v41 = vpack.c.bf16 %v2033_v20, %v2029_v38 }
 0x19d   : > { %v2537_v11 = vrot.slane %v1692_v26, %v4432_v25  ;;  %v1658_v29 = vpop.xlane.xlu0 %1657  ;;  %v3621_v30 = vpack.c.bf16 %v2035_v6, %v2031_v0  ;;  %v3625_v26 = vpack.c.bf16 %v2043_v47, %v2039_v43 }
 0x19e   : > { %v2453_v32 = vrot.slane %v1658_v29, %v4418_v3  ;;  %v2047_v29 = vld [vmem:[%s4098_s28 + $0x650] sm:$0xff] }
 0x19f   : > { %v2538_v1 = vsel %vm2276_vm2, %v2537_v11, %v2533_v45  ;;  %3486 = vmatpush1.bf16.msra.mxu0 %v3485_v60  ;;  %3614 = vmatpush1.bf16.msra.mxu1 %v3613_v12  ;;  %v2044_v45 = vld [vmem:[%s4098_s28 + $0x638] sm:$0xff] }
 0x1a0   : > { %v2454_v4 = vsel %vm2269_vm1, %v2453_v32, %v4840_v49  ;;  %v1820_v40 = vpop.xlane.xlu1 %1819  ;;  %3488 = vmatprep.subr.bf16.mxu0 %v3487_v37  ;;  %3616 = vmatprep.subr.bf16.mxu1 %v3615_v39  ;;  %v2048_v60 = vld [vmem:[%s4098_s28 + $0x658] sm:$0xff]  ;;  %v2045_v37 = vld [vmem:[%s4098_s28 + $0x640] sm:$0xff] }
 0x1a1   : > { %v2853_v15 = vrot.slane %v1820_v40, %v4432_v25  ;;  %v1786_v17 = vpop.xlane.xlu0 %1785  ;;  %v2052_v12 = vld [vmem:[%s4098_s28 + $0x678] sm:$0xff]  ;;  %v2049_v39 = vld [vmem:[%s4098_s28 + $0x660] sm:$0xff]  ;;  %v3629_v40 = vpack.c.bf16 %v2051_v34, %v2047_v29 }
 0x1a2   : > { %v2769_v49 = vrot.slane %v1786_v17, %v4418_v3  ;;  %v3623_v3 = vpack.c.bf16 %v2044_v45, %v2040_v23  ;;  %v3627_v11 = vpack.c.bf16 %v2052_v12, %v2048_v60  ;;  %v2059_v17 = vld [vmem:[%s4098_s28 + $0x6b0] sm:$0xff] }
 0x1a3   : > { %v2854_v51 = vsel %vm2276_vm2, %v2853_v15, %v2849_v55  ;;  %3490 = vmatpush1.bf16.msra.mxu0 %v3489_v57  ;;  %3618 = vmatpush1.bf16.msra.mxu1 %v3617_v8  ;;  %v2050_v55 = vld [vmem:[%s4098_s28 + $0x668] sm:$0xff]  ;;  %v2056_v57 = vld [vmem:[%s4098_s28 + $0x698] sm:$0xff]  ;;  %v2055_v15 = vld [vmem:[%s4098_s28 + $0x690] sm:$0xff] }
 0x1a4   : > { %v2770_v58 = vsel %vm2269_vm1, %v2769_v49, %v2765_v2  ;;  %v1694_v14 = vpop.xlane.xlu1 %1693  ;;  %3492 = vmatprep.subr.bf16.mxu0 %v3491_v62  ;;  %3620 = vmatprep.subr.bf16.mxu1 %v3619_v42  ;;  %v3497_v2 = vpack.c.bf16 %v2041_v36, %v2037_v56  ;;  %v3499_v33 = vpack.c.bf16 %v2050_v55, %v2046_v7  ;;  %v2060_v8 = vld [vmem:[%s4098_s28 + $0x6b8] sm:$0xff]  ;;  %v2053_v62 = vld [vmem:[%s4098_s28 + $0x680] sm:$0xff]  ;;  %v2066_v49 = vld [vmem:[%s4098_s28 + $0x6e8] sm:$0xff] }
 0x1a5   : > { %v2542_v21 = vrot.slane %v1694_v14, %v4453_v54  ;;  %v1660_v10 = vpop.xlane.xlu0 %1659  ;;  %v2057_v42 = vld [vmem:[%s4098_s28 + $0x6a0] sm:$0xff]  ;;  %v3507_v47 = vpack.c.bf16 %v2066_v49, %v2062_v44  ;;  %v2070_v55 = vld [vmem:[%s4098_s28 + $0x708] sm:$0xff]  ;;  %v2079_v44 = vld [vmem:[%s4098_s28 + $0x750] sm:$0xff] }
 0x1a6   : > { %v2458_v19 = vrot.slane %v1660_v10, %v4432_v25  ;;  %v3505_v36 = vpack.c.bf16 %v2057_v42, %v2053_v62  ;;  %v2061_v14 = vld [vmem:[%s4098_s28 + $0x6c0] sm:$0xff]  ;;  %v2067_v10 = vld [vmem:[%s4098_s28 + $0x6f0] sm:$0xff] }
 0x1a7   : > { %v2543_v22 = vsel %vm2283_vm3, %v2542_v21, %v2538_v1  ;;  %3494 = vmatpush1.bf16.msra.mxu0 %v3493_v41  ;;  %3622 = vmatpush1.bf16.msra.mxu1 %v3621_v30  ;;  %v2058_v1 = vld [vmem:[%s4098_s28 + $0x6a8] sm:$0xff]  ;;  %v2068_v41 = vld [vmem:[%s4098_s28 + $0x6f8] sm:$0xff]  ;;  %v2063_v21 = vld [vmem:[%s4098_s28 + $0x6d0] sm:$0xff] }
 0x1a8   : > { %v2459_v35 = vsel %vm2276_vm2, %v2458_v19, %v2454_v4  ;;  %v1822_v27 = vpop.xlane.xlu1 %1821  ;;  %3496 = vmatprep.subr.bf16.mxu0 %v3495_v16  ;;  %3624 = vmatprep.subr.bf16.mxu1 %v3623_v3  ;;  %v3501_v4 = vpack.c.bf16 %v2049_v39, %v2045_v37  ;;  %v3503_v50 = vpack.c.bf16 %v2058_v1, %v2054_v52  ;;  %v2065_v16 = vld [vmem:[%s4098_s28 + $0x6e0] sm:$0xff]  ;;  %v2074_v19 = vld [vmem:[%s4098_s28 + $0x728] sm:$0xff]  ;;  %v2071_v52 = vld [vmem:[%s4098_s28 + $0x710] sm:$0xff] }
 0x1a9   : > { %v2858_v53 = vrot.slane %v1822_v27, %v4453_v54  ;;  %v1788_v32 = vpop.xlane.xlu0 %1787  ;;  %v3509_v39 = vpack.c.bf16 %v2065_v16, %v2061_v14  ;;  %v2069_v27 = vld [vmem:[%s4098_s28 + $0x700] sm:$0xff]  ;;  %v3511_v34 = vpack.c.bf16 %v2074_v19, %v2070_v55  ;;  %v2100_v19 = vld [vmem:[%s4098_s28 + $0x7f8] sm:$0xff] }
 0x1aa   : > { %v2774_v38 = vrot.slane %v1788_v32, %v4432_v25  ;;  %v3631_v25 = vpack.c.bf16 %v2060_v8, %v2056_v57  ;;  %v2078_v32 = vld [vmem:[%s4098_s28 + $0x748] sm:$0xff]  ;;  %v2085_v14 = vld [vmem:[%s4098_s28 + $0x780] sm:$0xff] }
 0x1ab   : > { %v2859_v20 = vsel %vm2283_vm3, %v2858_v53, %v2854_v51  ;;  %3498 = vmatpush1.bf16.msra.mxu0 %v3497_v2  ;;  %3626 = vmatpush1.bf16.msra.mxu1 %v3625_v26  ;;  %v2064_v51 = vld [vmem:[%s4098_s28 + $0x6d8] sm:$0xff]  ;;  %v2075_v53 = vld [vmem:[%s4098_s28 + $0x730] sm:$0xff]  ;;  %v2082_v8 = vld [vmem:[%s4098_s28 + $0x768] sm:$0xff] }
 0x1ac   : > { %v2775_v0 = vsel %vm2276_vm2, %v2774_v38, %v2770_v58  ;;  %v1696_v6 = vpop.xlane.xlu1 %1695  ;;  %3500 = vmatprep.subr.bf16.mxu0 %v3499_v33  ;;  %3628 = vmatprep.subr.bf16.mxu1 %v3627_v11  ;;  %v3633_v58 = vpack.c.bf16 %v2059_v17, %v2055_v15  ;;  %v3635_v7 = vpack.c.bf16 %v2068_v41, %v2064_v51  ;;  %v2076_v2 = vld [vmem:[%s4098_s28 + $0x738] sm:$0xff]  ;;  %v2073_v33 = vld [vmem:[%s4098_s28 + $0x720] sm:$0xff]  ;;  %v2090_v51 = vld [vmem:[%s4098_s28 + $0x7a8] sm:$0xff] }
 0x1ad   : > { %v2547_v23 = vrot.slane %v1696_v6, %v4473_v18  ;;  %v1662_v45 = vpop.xlane.xlu0 %1661  ;;  %v2080_v38 = vld [vmem:[%s4098_s28 + $0x758] sm:$0xff]  ;;  %v3513_v62 = vpack.c.bf16 %v2073_v33, %v2069_v27  ;;  %v3641_v42 = vpack.c.bf16 %v2075_v53, %v2071_v52  ;;  %v2081_v6 = vld [vmem:[%s4098_s28 + $0x760] sm:$0xff]  ;;  %v3515_v15 = vpack.c.bf16 %v2082_v8, %v2078_v32 }
 0x1ae   : > { %v2463_v30 = vrot.slane %v1662_v45, %v4453_v54  ;;  %v2086_v45 = vld [vmem:[%s4098_s28 + $0x788] sm:$0xff]  ;;  %v2088_v41 = vld [vmem:[%s4098_s28 + $0x798] sm:$0xff]  ;;  %v2089_v16 = vld [vmem:[%s4098_s28 + $0x7a0] sm:$0xff] }
 0x1af   : > { %v2548_v56 = vsel %vm2290_vm4, %v2547_v23, %v2543_v22  ;;  %3502 = vmatpush1.bf16.msra.mxu0 %v3501_v4  ;;  %3630 = vmatpush1.bf16.msra.mxu1 %v3629_v40  ;;  %v2072_v22 = vld [vmem:[%s4098_s28 + $0x718] sm:$0xff]  ;;  %v2083_v23 = vld [vmem:[%s4098_s28 + $0x770] sm:$0xff]  ;;  %v2097_v33 = vld [vmem:[%s4098_s28 + $0x7e0] sm:$0xff] }
 0x1b0   : > { %v2464_v3 = vsel %vm2283_vm3, %v2463_v30, %v2459_v35  ;;  %v1824_v43 = vpop.xlane.xlu1 %1823  ;;  %3504 = vmatprep.subr.bf16.mxu0 %v3503_v50  ;;  %3632 = vmatprep.subr.bf16.mxu1 %v3631_v25  ;;  %v3637_v35 = vpack.c.bf16 %v2067_v10, %v2063_v21  ;;  %v2092_v30 = vld [vmem:[%s4098_s28 + $0x7b8] sm:$0xff]  ;;  %v2091_v21 = vld [vmem:[%s4098_s28 + $0x7b0] sm:$0xff]  ;;  %v2094_v10 = vld [vmem:[%s4098_s28 + $0x7c8] sm:$0xff] }
 0x1b1   : > { %v2863_v60 = vrot.slane %v1824_v43, %v4473_v18  ;;  %v1790_v12 = vpop.xlane.xlu0 %1789 }
 0x1b2   : > { %v2779_v26 = vrot.slane %v1790_v12, %v4453_v54  ;;  %v3639_v54 = vpack.c.bf16 %v2076_v2, %v2072_v22  ;;  %v2096_v12 = vld [vmem:[%s4098_s28 + $0x7d8] sm:$0xff]  ;;  %v3521_v22 = vpack.c.bf16 %v2089_v16, %v2085_v14 }
 0x1b3   : > { %v4936_v37 = vsel %vm2290_vm4, %v2863_v60, %v2859_v20  ;;  %3506 = vmatpush1.bf16.msra.mxu0 %v3505_v36  ;;  %3634 = vmatpush1.bf16.msra.mxu1 %v3633_v58  ;;  %v2084_v20 = vld [vmem:[%s4098_s28 + $0x778] sm:$0xff]  ;;  %v3645_v58 = vpack.c.bf16 %v2083_v23, %v2079_v44  ;;  %v2098_v60 = vld [vmem:[%s4098_s28 + $0x7e8] sm:$0xff]  ;;  %v3651_v27 = vpack.c.bf16 %v2100_v19, %v2096_v12 }
 0x1b4   : > { %v2780_v11 = vsel %vm2283_vm3, %v2779_v26, %v2775_v0  ;;  %v1698_v29 = vpop.xlane.xlu1 %1697  ;;  %3508 = vmatprep.subr.bf16.mxu0 %v3507_v47  ;;  %3636 = vmatprep.subr.bf16.mxu1 %v3635_v7  ;;  %v2077_v0 = vld [vmem:[%s4098_s28 + $0x740] sm:$0xff]  ;;  %v3643_v17 = vpack.c.bf16 %v2084_v20, %v2080_v38  ;;  %v3519_v47 = vpack.c.bf16 %v2090_v51, %v2086_v45 }
 0x1b5   : > { %v2552_v1 = vrot.slane %v1698_v29, %v4493_v48  ;;  %v1664_v57 = vpop.xlane.xlu0 %1663  ;;  %v3517_v36 = vpack.c.bf16 %v2081_v6, %v2077_v0  ;;  %v3647_v7 = vpack.c.bf16 %v2092_v30, %v2088_v41  ;;  %v2093_v26 = vld [vmem:[%s4098_s28 + $0x7c0] sm:$0xff]  ;;  %v2099_v29 = vld [vmem:[%s4098_s28 + $0x7f0] sm:$0xff] }
 0x1b6   : > { %v2468_v4 = vrot.slane %v1664_v57, %v4473_v18 }
 0x1b7   : > { %v4950_v40 = vsel %vm2297_vm5, %v2552_v1, %v2548_v56  ;;  %3510 = vmatpush1.bf16.msra.mxu0 %v3509_v39  ;;  %3638 = vmatpush1.bf16.msra.mxu1 %v3637_v35  ;;  %v3523_v35 = vpack.c.bf16 %v2098_v60, %v2094_v10 }
 0x1b8   : > { %v4955_v50 = vsel %vm2290_vm4, %v2468_v4, %v2464_v3  ;;  %v4957_v25 = vpop.xlane.xlu1 %1825  ;;  %3512 = vmatprep.subr.bf16.mxu0 %v3511_v34  ;;  %3640 = vmatprep.subr.bf16.mxu1 %v3639_v54  ;;  %v3525_v54 = vpack.c.bf16 %v2097_v33, %v2093_v26 }
 0x1b9   : > { %v1792_v49 = vpop.xlane.xlu0 %1791 }
 0x1ba   : > { %v2784_v56 = vrot.slane %v1792_v49, %v4473_v18  ;;  %v2087_v18 = vld [vmem:[%s4098_s28 + $0x790] sm:$0xff] }
 0x1bb   : > { %3514 = vmatpush1.bf16.msra.mxu0 %v3513_v62  ;;  %3642 = vmatpush1.bf16.msra.mxu1 %v3641_v42  ;;  %v3649_v2 = vpack.c.bf16 %v2091_v21, %v2087_v18 }
 0x1bc   : > { %v4969_v3 = vsel %vm2290_vm4, %v2784_v56, %v2780_v11  ;;  %v4971_v43 = vpop.xlane.xlu1 %1699  ;;  %3516 = vmatprep.subr.bf16.mxu0 %v3515_v15  ;;  %3644 = vmatprep.subr.bf16.mxu1 %v3643_v17  ;;  %v2095_v11 = vld [vmem:[%s4098_s28 + $0x7d0] sm:$0xff] }
 0x1bd   : > { %v4976_v55 = vpop.xlane.xlu0 %1665  ;;  %v3653_v52 = vpack.c.bf16 %v2099_v29, %v2095_v11  ;;  %v2557_v14 = vrot.slane %v4971_v43, %v4633_v61 }
 0x1bf   : > { %3518 = vmatpush1.bf16.msra.mxu0 %v3517_v36  ;;  %3646 = vmatpush1.bf16.msra.mxu1 %v3645_v58  ;;  %v2868_v58 = vrot.slane %v4957_v25, %v4493_v48  ;;  %v2558_v43 = vsel %vm2304_vm6, %v2557_v14, %v4950_v40 }
 0x1c0   : > { %v1828_v39 = vpop.xlane.xlu1 %1827  ;;  %3520 = vmatprep.subr.bf16.mxu0 %v3519_v47  ;;  %3648 = vmatprep.subr.bf16.mxu1 %v3647_v7  ;;  %v2473_v47 = vrot.slane %v4976_v55, %v4493_v48 }
 0x1c1   : > { %v1794_v34 = vpop.xlane.xlu0 %1793  ;;  %v2873_v7 = vrot.slane %v1828_v39, %v4633_v61  ;;  %v2869_v25 = vsel %vm2297_vm5, %v2868_v58, %v4936_v37 }
 0x1c2   : > { %v2789_v18 = vrot.slane %v1794_v34, %v4493_v48  ;;  %v2474_v48 = vsel %vm2297_vm5, %v2473_v47, %v4955_v50 }
 0x1c3   : > { %3522 = vmatpush1.bf16.msra.mxu0 %v3521_v22  ;;  %3650 = vmatpush1.bf16.msra.mxu1 %v3649_v2  ;;  %v2874_v22 = vsel %vm2304_vm6, %v2873_v7, %v2869_v25 }
 0x1c4   : > { %v1702_v53 = vpop.xlane.xlu1 %1701  ;;  %3524 = vmatprep.subr.bf16.mxu0 %v3523_v35  ;;  %3652 = vmatprep.subr.bf16.mxu1 %v3651_v27  ;;  %v2790_v37 = vsel %vm2297_vm5, %v2789_v18, %v4969_v3 }
 0x1c5   : > { %v1668_v32 = vpop.xlane.xlu0 %1667  ;;  %v2562_v21 = vrot.slane %v1702_v53, %v4641_v9 }
 0x1c6   : > { %v2478_v10 = vrot.slane %v1668_v32, %v4633_v61 }
 0x1c7   : > { %3526 = vmatpush1.bf16.msra.mxu0 %v3525_v54  ;;  %3654 = vmatpush1.bf16.msra.mxu1 %v3653_v52  ;;  %v2563_v35 = vsel %vm2311_vm7, %v2562_v21, %v2558_v43 }
 0x1c8   : > { %v1830_v1 = vpop.xlane.xlu1 %1829  ;;  %v2479_v27 = vsel %vm2304_vm6, %v2478_v10, %v2474_v48 }
 0x1c9   : > { %v1796_v57 = vpop.xlane.xlu0 %1795  ;;  %v2878_v12 = vrot.slane %v1830_v1, %v4641_v9 }
 0x1ca   : > { %v2794_v19 = vrot.slane %v1796_v57, %v4633_v61 }
 0x1cb   : > { %v2879_v29 = vsel %vm2311_vm7, %v2878_v12, %v2874_v22 }
 0x1cc   : > { %v1704_v8 = vpop.xlane.xlu1 %1703  ;;  %v2795_v34 = vsel %vm2304_vm6, %v2794_v19, %v2790_v37 }
 0x1cd   : > { %v1670_v38 = vpop.xlane.xlu0 %1669  ;;  %v2567_v2 = vrot.slane %v1704_v8, %v4645_v13 }
 0x1ce   : > { %v2483_v26 = vrot.slane %v1670_v38, %v4641_v9 }
 0x1cf   : > { %v2568_v52 = vsel %vm2318_vm8, %v2567_v2, %v2563_v35 }
 0x1d0   : > { %v1832_v20 = vpop.xlane.xlu1 %1831  ;;  %v2484_v53 = vsel %vm2311_vm7, %v2483_v26, %v2479_v27 }
 0x1d1   : > { %v1798_v4 = vpop.xlane.xlu0 %1797  ;;  %v2883_v40 = vrot.slane %v1832_v20, %v4645_v13 }
 0x1d2   : > { %v2799_v39 = vrot.slane %v1798_v4, %v4641_v9 }
 0x1d3   : > { %v2884_v57 = vsel %vm2318_vm8, %v2883_v40, %v2879_v29 }
 0x1d4   : > { %v1706_v62 = vpop.xlane.xlu1 %1705  ;;  %v2800_v8 = vsel %vm2311_vm7, %v2799_v39, %v2795_v34 }
 0x1d5   : > { %v1672_v42 = vpop.xlane.xlu0 %1671  ;;  %v2572_v61 = vrot.slane %v1706_v62, %v4650_v28 }
 0x1d6   : > { %v2488_v50 = vrot.slane %v1672_v42, %v4645_v13 }
 0x1d7   : > { %v2573_v38 = vsel %vm2325_vm9, %v2572_v61, %v2568_v52  ;;  %v2109_v52 = vsub.s32 1, %v4383_v24 }
 0x1d8   : > { %v1834_v0 = vpop.xlane.xlu1 %1833  ;;  %v2489_v20 = vsel %vm2318_vm8, %v2488_v50, %v2484_v53  ;;  %v3907_v53 = vmov 1983009808  }
 0x1d9   : > { %v1800_v6 = vpop.xlane.xlu0 %1799  ;;  %v2888_v33 = vrot.slane %v1834_v0, %v4650_v28 }
 0x1da   : > { %v2804_v3 = vrot.slane %v1800_v6, %v4645_v13 }
 0x1db   : > { %v2889_v4 = vsel %vm2325_vm9, %v2888_v33, %v2884_v57 }
 0x1dc   : > { %v1708_v15 = vpop.xlane.xlu1 %1707  ;;  %v2805_v6 = vsel %vm2318_vm8, %v2804_v3, %v2800_v8  ;;  %v2105_v3 = vsub.s32 0, %v4383_v24 }
 0x1dd   : > { %v1674_v17 = vpop.xlane.xlu0 %1673  ;;  %v2577_v54 = vrot.slane %v1708_v15, %v4662_v46 }
 0x1de   : > { %v2493_v32 = vrot.slane %v1674_v17, %v4650_v28 }
 0x1df   : > { %v2578_v15 = vsel %vm2332_vm10, %v2577_v54, %v2573_v38  ;;  %v2113_v54 = vsub.s32 2, %v4383_v24 }
 0x1e0   : > { %v1836_v44 = vpop.xlane.xlu1 %1835 }
 0x1e1   : > { %v4985_v23 = vpop.xlane.xlu0 %1801  ;;  %v2893_v1 = vrot.slane %v1836_v44, %v4662_v46 }
 0x1e2   : > { %v2809_v13 = vrot.slane %v4985_v23, %v4650_v28  ;;  %v2494_v23 = vsel %vm2325_vm9, %v2493_v32, %v2489_v20  ;;  %v2117_v32 = vsub.s32 3, %v4383_v24 }
 0x1e3   : > { %v2894_v58 = vsel %vm2332_vm10, %v2893_v1, %v2889_v4 }
 0x1e4   : > { %v4987_v45 = vpop.xlane.xlu1 %1709  ;;  %v2810_v14 = vsel %vm2325_vm9, %v2809_v13, %v2805_v6 }
 0x1e5   : > { %v4989_v49 = vpop.xlane.xlu0 %1675  ;;  %v2582_v62 = vrot.slane %v4987_v45, %v4673_v5 }
 0x1e6   : > { %v2498_v47 = vrot.slane %v4989_v49, %v4662_v46 }
 0x1e8   : > { %v4991_v51 = vpop.xlane.xlu1 %1837  ;;  %v2499_v26 = vsel %vm2332_vm10, %v2498_v47, %v2494_v23 }
 0x1e9   : > { %v4993_v41 = vpop.xlane.xlu0 %1803  ;;  %v2898_v42 = vrot.slane %v4991_v51, %v4673_v5 }
 0x1eb   : > { %v2899_v18 = vsel %vm2339_vm11, %v2898_v42, %v2894_v58 }
 0x1ec   : > { %v4995_v30 = vpop.xlane.xlu1 %1711 }
 0x1ed   : > { %v4997_v56 = vpop.xlane.xlu0 %1677  ;;  %v2587_v17 = vrot.slane %v4995_v30, %v4678_v59  ;;  %v2814_v30 = vrot.slane %v4993_v41, %v4662_v46 }
 0x1ee   : > { %v2503_v21 = vrot.slane %v4997_v56, %v4673_v5 }
 0x1f0   : > { %v4999_v36 = vpop.xlane.xlu1 %1839 }
 0x1f1   : > { %v5005_v16 = vpop.xlane.xlu0 %1805  ;;  %v2903_v28 = vrot.slane %v4999_v36, %v4678_v59  ;;  %v2583_v36 = vsel %vm2339_vm11, %v2582_v62, %v2578_v15 }
 0x1f2   : > { %v2819_v10 = vrot.slane %v5005_v16, %v4673_v5  ;;  %v2588_v25 = vsel %vm2346_vm12, %v2587_v17, %v2583_v36  ;;  %v2815_v5 = vsel %vm2332_vm10, %v2814_v30, %v2810_v14 }
 0x1f3   : > { %v2904_v49 = vsel %vm2346_vm12, %v2903_v28, %v2899_v18 }
 0x1f4   : > { %v1714_v60 = vpop.xlane.xlu1 %1713  ;;  %v2820_v37 = vsel %vm2339_vm11, %v2819_v10, %v2815_v5 }
 0x1f5   : > { %v5019_v55 = vpop.xlane.xlu0 %1679  ;;  %v2592_v45 = vrot.slane %v1714_v60, %v4681_v63 }
 0x1f6   : > { %v2508_v19 = vrot.slane %v5019_v55, %v4678_v59 }
 0x1f7   : > { %v2593_v12 = vsel %vm2353_vm13, %v2592_v45, %v2588_v25 }
 0x1f8   : > { %v1842_v11 = vpop.xlane.xlu1 %1841 }
 0x1f9   : > { %v1808_v9 = vpop.xlane.xlu0 %1807  ;;  %v2908_v51 = vrot.slane %v1842_v11, %v4681_v63 }
 0x1fa   : > { %v2824_v43 = vrot.slane %v1808_v9, %v4678_v59  ;;  %v2504_v59 = vsel %vm2339_vm11, %v2503_v21, %v2499_v26  ;;  %v2101_v9 = vld [vmem:[#allocation8] sm:$0xf] }
 0x1fb   : > { %v2909_v56 = vsel %vm2353_vm13, %v2908_v51, %v2904_v49  ;;  %v2106_v1 = vrot.slane %v2101_v9, %v2105_v3  ;;  %v2114_v57 = vrot.slane %v2101_v9, %v2113_v54  ;;  %v2110_v8 = vrot.slane %v2101_v9, %v2109_v52 }
 0x1fc   : > { %v1716_v0 = vpop.xlane.xlu1 %1715  ;;  %v2825_v55 = vsel %vm2346_vm12, %v2824_v43, %v2820_v37  ;;  %v2118_v13 = vrot.slane %v2101_v9, %v2117_v32 }
 0x1fd   : > { %v1682_v44 = vpop.xlane.xlu0 %1681  ;;  %v2597_v7 = vrot.slane %v1716_v0, %v4690_v31 }
 0x1fe   : > { %v2513_v16 = vrot.slane %v1682_v44, %v4681_v63 }
 0x1ff   : > { %v2598_v22 = vsel %vm2360_vm14, %v2597_v7, %v2593_v12 }
 0x200   : > { %v1844_v60 = vpop.xlane.xlu1 %1843 }
 0x201   : > { %v2913_v46 = vrot.slane %v1844_v60, %v4690_v31  ;;  %v1810_v41 = vpop.xlane.xlu0 %1809 }
 0x202   : > { %v2829_v48 = vrot.slane %v1810_v41, %v4681_v63  ;;  %v2509_v63 = vsel %vm2346_vm12, %v2508_v19, %v2504_v59 }
 0x203   : > { %v2914_v2 = vsel %vm2360_vm14, %v2913_v46, %v2909_v56  ;;  %v2514_v33 = vsel %vm2353_vm13, %v2513_v16, %v2509_v63 }
 0x204   : > { %v1812_v40 = vpop.xlane.xlu1 %1811  ;;  %v2919_v39 = vsel %vm2915_vm15, %v2914_v2, %v2598_v22  ;;  %v2830_v27 = vsel %vm2353_vm13, %v2829_v48, %v2825_v55 }
 0x205   : > { %v2834_v61 = vrot.slane %v1812_v40, %v4690_v31  ;;  %v1684_v35 = vpop.xlane.xlu0 %1683  ;;  %3059 = vmatprep.mubr.f32.mxu0 %v2919_v39  ;;  %3201 = vmatprep.mubr.f32.mxu1 %v2919_v39 }
 0x206   : > { %v2518_v50 = vrot.slane %v1684_v35, %v4690_v31  ;;  %v3215_v31 = vunpack.c.l.s4 %v3907_v53 }
 0x207   : > { %v2835_v11 = vsel %vm2360_vm14, %v2834_v61, %v2830_v27 }
 0x208   : > { %v2519_v29 = vsel %vm2360_vm14, %v2518_v50, %v2514_v33  ;;  %v3216_v38 = vunpack.c.0.s8 %v3215_v31 }
 0x209   : > { %v2918_v34 = vsel %vm2915_vm15, %v2835_v11, %v2519_v29 }
 0x20a   : > { %3060 = vmatmul.mubr.f32.vlgmr.msra.gmra.mrb[0].mxu0 %v2918_v34  ;;  %3202 = vmatmul.mubr.f32.vlgmr.msra.gmra.mrb[0].mxu1 %v2918_v34  ;;  %v3219_v17 = vsub.s32 %v3216_v38, %v4383_v24 }
 0x2dd   : > { %v3061_v20 = vpop.f32.mrb[0].mxu0  ;;  %v3203_v4 = vpop.f32.mrb[0].mxu1 }
 0x2de   : > { %v3655_v62 = vadd.f32 %v3061_v20, %v2106_v1  ;;  %v3657_v42 = vadd.f32 %v3203_v4, %v2114_v57  ;;  %v3063_v0 = vpop.f32.mrb[1].mxu0  ;;  %v3205_v6 = vpop.f32.mrb[1].mxu1 }
 0x2df   : > { %v3656_v15 = vadd.f32 %v3063_v0, %v2110_v8  ;;  %v3658_v28 = vadd.f32 %v3205_v6, %v2118_v13 }
 0x2e1   : > { %v3212_v44 = vcombine.low %v3655_v62, %v3656_v15  ;;  %v3213_v23 = vcombine.low %v3657_v42, %v3658_v28 }
 0x2e3   : > { %v3220_v58 = vrot.slane %v3212_v44, %v3219_v17  ;;  %v3227_v45 = vrot.slane %v3213_v23, %v3219_v17 }
 0x2e5   : > { %v3228_v51 = vcombine.low %v3220_v58, %v3227_v45 }
 0x2e7   : > { %3230 = vst [vmem:[%s297_s11] sm:$0xff] %v3228_v51 }
 0x2e8   : > { %3818 = shalt.err (!%p3815_p11)
}
 0x2e9   : > { %s3819_s21 = scalar_lea.hbm %s5112_s7, 128  ;;  %s3823_s30 = scalar_lea.hbm %s5164_s3, 256 }
 0x2ea   : > { %p3820_p0 = scmp.ne.s32.totalorder %s5112_s7, %s3819_s21  ;;  %p3824_p4 = scmp.lt.u32.totalorder %s5112_s7, %s5164_s3 }
 0x2eb   : > { %p3825_p6 = scmp.lt.u32.totalorder %s3823_s30, %s3819_s21  ;;  %p3827_p12 = scmp.lt.u32.totalorder %s3819_s21, %s5112_s7 }
 0x2ec   : > { %p3821_p9 = pnand %p3820_p0, %p5187_p10 }
 0x2ed   : > { %p3826_p7 = por %p3825_p6, %p3824_p4 }
 0x2ee   : > { %p3822_p2 = pneg %p3821_p9 }
 0x2ef   : > { %p3828_p13 = por %p3827_p12, %p3826_p7 }
 0x2f1   : > { %p3829_p1 = pnand %p3828_p13, %p3822_p2 }
 0x2f3   : > { %3832 = shalt.err (!%p3829_p1)
}
 0x2f4   : > { %3678 = dma.vmem_to_hbm [thread:$0]  (%p5187_p10), %s5114_s29, 128, %s5112_s7, %s3232_s4  }
 0x2f5 PF: > { %s3260_s20 = sand.u32 1, %s3875_s12   ;;  %p5188_p5 = scmp.ne.s32.totalorder %s5177_s27, 0 }
 0x2f6   : > { %s3261_s22 = scalar_lea.sflag [#allocation5], %s3260_s20 }
 0x2f7   : > { %p3685_p8 = pnand %p3373_p3, %p5188_p5 }
 0x2f9   : > { %3870 = dma.done.wait (!%p3685_p8), %s3261_s22, 128  }
 0x2fa   : > { %3872 = vsyncadd (!%p3685_p8), %s3261_s22, 4294967168  ;;  %s22_s17 = sadd.s32 1, %s3895_s17   ;;  %s5189_s25 = sld [smem:[#allocation17_spill]] }
 0x2fb   : > { %p19_p11 = scmp.ge.s32.totalorder %s22_s17, 4   ;;  %s5190_s12 = smov %s3879_s13 }
 0x2fc   : > { %s5191_s13 = smov %s3883_s14  ;;  %s5192_s14 = smov %s3991_s26 }
 0x2fd   : > { %s5193_s15 = smov %s3891_s16  ;;  %21 = sbr.rel (!%p19_p11) target bundleno = 11 (0xb), region = 107 }
 0x300   : > { %s5194_s16 = smov %s5189_s25 }
 0x304   :  { %3266 = vsyncpa [#allocation4], 1 }
 0x305   :  { %3268 = vsyncpa [#allocation4 + $0x1], 1 }
 0x306   :  { %3269 = vsyncpa [#allocation7], 1 }
 0x307   :  { %3271 = vsyncpa [#allocation7 + $0x1], 1 }
 0x308   :  { %3272 = vsyncpa [#allocation5], 1 }
 0x309   :  { %3274 = vsyncpa [#allocation5 + $0x1], 1 }

</bundles_post_ra>
